<compile_context>
chip_gen: v7x
topology: tpu7x:2x2x1
jax: 0.10.0
libtpu: 0.0.40
codegen_flags: <defaults>
</compile_context>

<pallas_src>
import functools

import jax
import jax.numpy as jnp
from jax.experimental import pallas as pl
from jax.experimental.pallas import tpu as pltpu

ACT_DTYPE = jnp.bfloat16   # HBM storage dtype for activations
EPS = 1e-5                 # BatchNorm eps (PyTorch default)
LANE = 128


def _round_up(x, m):
    return (x + m - 1) // m * m


def _vmem_limit_bytes(*parts):
    # Explicit scoped-VMEM limit sized from the actual blocks/scratch with
    # headroom, clamped so it is valid on v5e/v6e (128 MiB) and v7x (64 MiB).
    need = int(sum(parts))
    return int(min(max(4 * need + (8 << 20), 32 << 20), 64 << 20))


# ---------------------------------------------------------------------------
# Fused 3x3x3 conv kernel (one padded-depth output plane per grid step):
#   [prev BN affine + ReLU on load] -> 27 pltpu.roll taps -> pat [K, PLANE]
#   -> one matmul wT @ pat -> lane-dense [Cout, PLANE] store
#   -> per-plane partial BN (sum, sumsq)
# ---------------------------------------------------------------------------
def _conv3_kernel(x_ref, sc_ref, sh_ref, mask_ref, w_ref,     # inputs
                  y_ref, st_ref,                              # outputs
                  pat_ref,                                    # VMEM scratch
                  *, D, Wp, Cin, apply_act):
    dp = pl.program_id(1)                         # padded depth index 0..D+1
    interior = jnp.logical_and(dp >= 1, dp <= D)
    plane = pat_ref.shape[-1]

    @pl.when(interior)
    def _():
        mask = mask_ref[...]                                   # [1, PLANE] f32
        for kd in range(3):
            # One input plane feeds 9 taps; process (affine+ReLU) it once.
            src = x_ref[0, dp - 1 + kd].astype(jnp.float32)    # [Cin, PLANE]
            if apply_act:
                # Deferred BatchNorm affine + ReLU of the producing layer;
                # re-zero pad/border lanes so the conv's zero padding stays exact.
                src = jnp.maximum(src * sc_ref[...] + sh_ref[...], 0.0) * mask
            for kh in range(3):
                for kw in range(3):
                    t = (kd * 3 + kh) * 3 + kw
                    s = (kh - 1) * Wp + (kw - 1)               # in-plane tap shift
                    rolled = src if s == 0 else pltpu.roll(src, (-s) % plane,
                                                           axis=1)
                    # lane-dense [Cin, PLANE] write, K on sublanes.
                    pat_ref[t * Cin:(t + 1) * Cin, :] = rolled

        # Transposed GEMM: [Cout, K] @ [K, PLANE] -> lane-dense [Cout, PLANE].
        y = jnp.dot(w_ref[...], pat_ref[...],
                    preferred_element_type=jnp.float32)
        y = y * mask       # roll junk lives only on pad/border lanes -> zero it
        y_ref[0, 0] = y.astype(y_ref.dtype)

        # Per-plane partial BatchNorm statistics (reduced in a JAX epilogue);
        # pad lanes are already zero so they do not contribute.
        st_ref[0, 0, :, 0:1] = jnp.sum(y, axis=1, keepdims=True)
        st_ref[0, 0, :, 1:2] = jnp.sum(y * y, axis=1, keepdims=True)

    @pl.when(jnp.logical_not(interior))
    def _():
        # Depth-padding planes of the output: exact zeros (= next conv's padding).
        y_ref[...] = jnp.zeros_like(y_ref)
        st_ref[...] = jnp.zeros_like(st_ref)


def make_plane_mask(H, W):
    P = (H + 2) * (W + 2)
    plane = _round_up(P, LANE)
    hq = jnp.arange(H + 2)[:, None]
    wq = jnp.arange(W + 2)[None, :]
    m = (hq >= 1) & (hq <= H) & (wq >= 1) & (wq <= W)
    m = jnp.pad(m.reshape(1, P), ((0, 0), (0, plane - P)))
    return m.astype(jnp.float32)


def conv3x3_bn(xp, scale, shift, w, *, D, H, W, apply_act):
    """3x3x3 conv (padding=1, bias dropped: it cancels under the downstream BN)
    + per-plane BN partial stats, on a padded-layout activation.

    xp: [N, D+2, Cin, PLANE] bf16 (raw / pre-affine, zero pads).
    w : [Cout, Cin, 3, 3, 3] torch layout.
    Returns (y [N, D+2, Cout, PLANE] bf16, stats [N, D+2, Cout, 2] f32).
    """
    N, Dp2, Cin, plane = xp.shape
    assert Dp2 == D + 2
    Cout = w.shape[0]
    K = 27 * Cin
    # wT row order matches pat rows: k = t*Cin + ci with t = (kd*3+kh)*3+kw.
    wT = jnp.transpose(w, (0, 2, 3, 4, 1)).reshape(Cout, K).astype(jnp.float32)
    if scale is None:
        scale = jnp.ones((Cin, 1), jnp.float32)
        shift = jnp.zeros((Cin, 1), jnp.float32)
    else:
        scale = scale.reshape(Cin, 1).astype(jnp.float32)
        shift = shift.reshape(Cin, 1).astype(jnp.float32)
    mask = make_plane_mask(H, W)

    kernel = functools.partial(_conv3_kernel, D=D, Wp=W + 2, Cin=Cin,
                               apply_act=apply_act)
    vmem = _vmem_limit_bytes(
        2 * (D + 2) * Cin * plane * 2,      # resident input volume (dbuf, bf16)
        2 * Cout * plane * 2,               # y plane blocks (dbuf, bf16)
        K * plane * 4,                      # pat scratch (f32)
        Cout * K * 4 + 4 * plane)           # weights + mask/scale/shift

    # TODO(synk): for very large volumes, chunk the resident input block into
    # D-slabs with a 1-plane halo instead of holding the whole padded volume.
    y, stats = pl.pallas_call(
        kernel,
        out_shape=(jax.ShapeDtypeStruct((N, D + 2, Cout, plane), ACT_DTYPE),
                   jax.ShapeDtypeStruct((N, D + 2, Cout, 2), jnp.float32)),
        grid_spec=pltpu.PrefetchScalarGridSpec(
            num_scalar_prefetch=0,
            grid=(N, D + 2),
            in_specs=[
                pl.BlockSpec((1, D + 2, Cin, plane), lambda n, d: (n, 0, 0, 0)),
                pl.BlockSpec((Cin, 1), lambda n, d: (0, 0)),
                pl.BlockSpec((Cin, 1), lambda n, d: (0, 0)),
                pl.BlockSpec((1, plane), lambda n, d: (0, 0)),
                pl.BlockSpec((Cout, K), lambda n, d: (0, 0)),
            ],
            out_specs=[
                pl.BlockSpec((1, 1, Cout, plane), lambda n, d: (n, d, 0, 0)),
                pl.BlockSpec((1, 1, Cout, 2), lambda n, d: (n, d, 0, 0)),
            ],
            scratch_shapes=[pltpu.VMEM((K, plane), jnp.float32)],
        ),
        # Every step writes distinct output blocks (no cross-step accumulation),
        # so both axes can be parallel (v7x megacore safe).
        compiler_params=pltpu.CompilerParams(
            dimension_semantics=("parallel", "parallel"),
            vmem_limit_bytes=vmem),
    )(xp, scale, shift, mask, wT)
    return y, stats


# ---------------------------------------------------------------------------
# Final 1x1x1 conv: fused (affine + ReLU) -> matmul + bias, one plane per step,
# lane-dense [Cout, PLANE] output.
# ---------------------------------------------------------------------------
def _conv1_kernel(x_ref, sc_ref, sh_ref, mask_ref, w_ref, b_ref, o_ref):
    x = x_ref[0, 0].astype(jnp.float32)                          # [Cin, PLANE]
    x = jnp.maximum(x * sc_ref[...] + sh_ref[...], 0.0) * mask_ref[...]
    y = jnp.dot(w_ref[...], x, preferred_element_type=jnp.float32) + b_ref[...]
    o_ref[0, 0] = y


def conv1x1(xp, scale, shift, w, b, *, D, H, W):
    N, Dp2, Cin, plane = xp.shape
    Cout = w.shape[0]
    w2 = w.reshape(Cout, Cin).astype(jnp.float32)
    b2 = b.reshape(Cout, 1).astype(jnp.float32)
    scale = scale.reshape(Cin, 1).astype(jnp.float32)
    shift = shift.reshape(Cin, 1).astype(jnp.float32)
    mask = make_plane_mask(H, W)
    vmem = _vmem_limit_bytes(2 * Cin * plane * 2, 2 * Cout * plane * 4,
                             Cout * Cin * 4 + 4 * plane)
    return pl.pallas_call(
        _conv1_kernel,
        out_shape=jax.ShapeDtypeStruct((N, D, Cout, plane), jnp.float32),
        grid_spec=pltpu.PrefetchScalarGridSpec(
            num_scalar_prefetch=0,
            grid=(N, D),
            in_specs=[
                pl.BlockSpec((1, 1, Cin, plane), lambda n, d: (n, d + 1, 0, 0)),
                pl.BlockSpec((Cin, 1), lambda n, d: (0, 0)),
                pl.BlockSpec((Cin, 1), lambda n, d: (0, 0)),
                pl.BlockSpec((1, plane), lambda n, d: (0, 0)),
                pl.BlockSpec((Cout, Cin), lambda n, d: (0, 0)),
                pl.BlockSpec((Cout, 1), lambda n, d: (0, 0)),
            ],
            out_specs=pl.BlockSpec((1, 1, Cout, plane),
                                   lambda n, d: (n, d, 0, 0)),
        ),
        compiler_params=pltpu.CompilerParams(
            dimension_semantics=("parallel", "parallel"),
            vmem_limit_bytes=vmem),
    )(xp, scale, shift, mask, w2, b2)


# ---------------------------------------------------------------------------
# JAX glue: layout helpers, BN scale/shift, x2 trilinear upsample, params
# ---------------------------------------------------------------------------
def to_padded(x_cl):
    """[N, D, H, W, C] -> [N, D+2, C, PLANE] bf16 with exact-zero pads."""
    N, D, H, W, C = x_cl.shape
    P = (H + 2) * (W + 2)
    plane = _round_up(P, LANE)
    x = jnp.transpose(x_cl, (0, 1, 4, 2, 3))                    # [N, D, C, H, W]
    x = jnp.pad(x, ((0, 0), (1, 1), (0, 0), (1, 1), (1, 1)))
    x = x.reshape(N, D + 2, C, P)
    x = jnp.pad(x, ((0, 0), (0, 0), (0, 0), (0, plane - P)))
    return x.astype(ACT_DTYPE)


def from_padded(xp, D, H, W):
    """[N, D+2, C, PLANE] -> channels-last [N, D, H, W, C] f32 (raw values)."""
    N, _, C, _ = xp.shape
    P = (H + 2) * (W + 2)
    x = xp[:, 1:D + 1, :, :P].reshape(N, D, C, H + 2, W + 2)
    x = x[:, :, :, 1:H + 1, 1:W + 1]
    return jnp.transpose(x, (0, 1, 3, 4, 2)).astype(jnp.float32)


def bn_scale_shift(stats, count, gamma, beta, eps=EPS):
    # Training-mode BatchNorm: biased batch variance over (N, D, H, W).
    # TODO(synk): E[x^2]-E[x]^2 in f32 can cancel for very large volumes; a
    # shifted/Welford-style per-block accumulation would be more robust.
    s = jnp.sum(stats[..., 0], axis=(0, 1))
    ss = jnp.sum(stats[..., 1], axis=(0, 1))
    mean = s / count
    var = jnp.maximum(ss / count - mean * mean, 0.0)
    scale = gamma / jnp.sqrt(var + eps)
    shift = beta - mean * scale
    return scale, shift


def _upsample_linear_axis(x, axis):
    in_size = x.shape[axis]
    out_size = in_size * 2
    dst = jnp.arange(out_size, dtype=jnp.float32)
    src = jnp.maximum((dst + 0.5) / 2.0 - 0.5, 0.0)   # align_corners=False
    i0 = jnp.floor(src).astype(jnp.int32)
    i1 = jnp.minimum(i0 + 1, in_size - 1)
    w1 = src - i0.astype(jnp.float32)
    x0 = jnp.take(x, i0, axis=axis)
    x1 = jnp.take(x, i1, axis=axis)
    bshape = [1] * x.ndim
    bshape[axis] = out_size
    w1 = w1.reshape(bshape)
    return x0 * (1.0 - w1) + x1 * w1


def upsample_x2(x_cl, pending=None):
    # TODO(synk): fold this fixed-weight (0.25/0.75) x2 trilinear lerp into the
    # following conv kernel's in-VMEM gather so the 8x-larger intermediate never
    # round-trips HBM; kept here as fused JAX glue producing a bf16 result.
    x = x_cl.astype(jnp.float32)
    if pending is not None:                   # deferred BN affine + ReLU
        sc, sh = pending
        x = jnp.maximum(x * sc.reshape(1, 1, 1, 1, -1)
                        + sh.reshape(1, 1, 1, 1, -1), 0.0)
    for axis in (1, 2, 3):                    # channels-last: spatial axes 1..3
        x = _upsample_linear_axis(x, axis)
    return x


def init_params(key, rows):
    # rows: synthetic csv config, each row = (in1, out1, in2, out2).
    # NOTE: conv biases that feed a training-mode BatchNorm cancel exactly
    # (shift = beta - mean*scale absorbs them) and are therefore omitted;
    # only the final 1x1x1 conv keeps its bias.
    params = []
    for r, (in1, out1, in2, out2) in enumerate(rows):
        is_final = r == len(rows) - 1
        k2 = 1 if is_final else 3
        keys = jax.random.split(key, 8)
        key = keys[0]
        p = {
            "w1": 0.1 * jax.random.normal(keys[1], (out1, in1, 3, 3, 3), jnp.float32),
            "g1": 1.0 + 0.1 * jax.random.normal(keys[2], (out1,), jnp.float32),
            "be1": 0.1 * jax.random.normal(keys[3], (out1,), jnp.float32),
            "w2": 0.1 * jax.random.normal(keys[4], (out2, in2, k2, k2, k2), jnp.float32),
        }
        if is_final:
            p["b2"] = 0.1 * jax.random.normal(keys[5], (out2,), jnp.float32)
        else:
            p["g2"] = 1.0 + 0.1 * jax.random.normal(keys[6], (out2,), jnp.float32)
            p["be2"] = 0.1 * jax.random.normal(keys[7], (out2,), jnp.float32)
        params.append(p)
    return params


def decoder_forward(x, params):
    # x: NCDHW float32 (PyTorch layout); layout change happens exactly once here
    # and once at the output boundary.
    N, _, D, H, W = x.shape
    x_cl = jnp.transpose(x, (0, 2, 3, 4, 1))
    pending = None   # deferred (scale, shift) of a BN+ReLU not yet applied
    xp = None        # raw activation in padded [N, D+2, C, PLANE] layout

    nblocks = len(params)
    for i in range(nblocks - 1):                   # Block_decoder blocks
        p = params[i]
        if i > 0:
            x_cl = from_padded(xp, D, H, W)        # raw output of previous block
        x_cl = upsample_x2(x_cl, pending)          # applies deferred BN+ReLU first
        pending = None
        N, D, H, W, _ = x_cl.shape
        cnt = N * D * H * W
        xp = to_padded(x_cl)

        # conv1 -> bn1 -> relu   (bn1+relu deferred into conv2's load)
        y1, st1 = conv3x3_bn(xp, None, None, p["w1"], D=D, H=H, W=W,
                             apply_act=False)
        sc1, sh1 = bn_scale_shift(st1, cnt, p["g1"], p["be1"])
        # conv2 -> bn2 -> relu   (bn2+relu deferred to the next consumer)
        xp, st2 = conv3x3_bn(y1, sc1, sh1, p["w2"], D=D, H=H, W=W,
                             apply_act=True)
        pending = bn_scale_shift(st2, cnt, p["g2"], p["be2"])
        # Dropout3d(p=0) is the identity and is omitted.
        # TODO(synk): p>0 Dropout3d (per-channel) would need the pltpu PRNG.

    # Block_decoder_final: conv(3x3x3, pad 1) -> BN -> ReLU -> conv(1x1x1)
    p = params[-1]
    if xp is None:
        xp = to_padded(x_cl)
    cnt = N * D * H * W
    if pending is None:
        y1, st1 = conv3x3_bn(xp, None, None, p["w1"], D=D, H=H, W=W,
                             apply_act=False)
    else:
        y1, st1 = conv3x3_bn(xp, pending[0], pending[1], p["w1"],
                             D=D, H=H, W=W, apply_act=True)
    sc1, sh1 = bn_scale_shift(st1, cnt, p["g1"], p["be1"])
    out = conv1x1(y1, sc1, sh1, p["w2"], p["b2"], D=D, H=H, W=W)

    # [N, D, Cout, PLANE] -> NCDHW (single boundary layout change)
    Cout = p["w2"].shape[0]
    out = out[:, :, :, :(H + 2) * (W + 2)]
    out = out.reshape(N, D, Cout, H + 2, W + 2)[:, :, :, 1:H + 1, 1:W + 1]
    return jnp.transpose(out, (0, 2, 1, 3, 4))


if __name__ == "__main__":
    key = jax.random.PRNGKey(0)
    k_in, k_par = jax.random.split(key)

    # synthetic csv config: [Block_decoder(8->8, 8->4), Block_decoder_final(4->4, 4->2)]
    rows = [(8, 8, 8, 4), (4, 4, 4, 2)]
    params = init_params(k_par, rows)

    # input NCDHW; after the x2 upsample the working volume is 1 x 8^3
    x = jax.random.normal(k_in, (1, 8, 4, 4, 4), jnp.float32)

    fwd = jax.jit(functools.partial(decoder_forward, params=params))
    out = jax.block_until_ready(fwd(x))
    assert out.shape == (1, 2, 8, 8, 8), out.shape
    assert bool(jnp.all(jnp.isfinite(out)))
    print("KERNEL_OK")
</pallas_src>

<mosaic_0001>
module attributes {stable_mosaic.version = 11 : i64} {
  func.func @_conv3_kernel(%arg0: i32, %arg1: i32, %arg2: memref<1x10x8x128xbf16, #tpu.memory_space<vmem>>, %arg3: memref<8x1xf32, #tpu.memory_space<vmem>>, %arg4: memref<8x1xf32, #tpu.memory_space<vmem>>, %arg5: memref<1x128xf32, #tpu.memory_space<vmem>>, %arg6: memref<8x216xf32, #tpu.memory_space<vmem>>, %arg7: memref<1x1x8x128xbf16, #tpu.memory_space<vmem>>, %arg8: memref<1x1x8x2xf32, #tpu.memory_space<vmem>>, %arg9: memref<216x128xf32, #tpu.memory_space<vmem>>) attributes {dimension_semantics = [#tpu.dimension_semantics<parallel>, #tpu.dimension_semantics<parallel>], iteration_bounds = array<i64: 1, 10>, scalar_prefetch = 0 : i64, scratch_operands = 1 : i64, tpu.core_type = #tpu.core_type<tc>, window_params = [{transform_indices = @transform_0, window_bounds = array<i64: 1, 10, 8, 128>}, {pipeline_mode = #tpu.pipeline_mode<synchronous>, transform_indices = @transform_1, window_bounds = array<i64: 8, 1>}, {pipeline_mode = #tpu.pipeline_mode<synchronous>, transform_indices = @transform_2, window_bounds = array<i64: 8, 1>}, {pipeline_mode = #tpu.pipeline_mode<synchronous>, transform_indices = @transform_3, window_bounds = array<i64: 1, 128>}, {pipeline_mode = #tpu.pipeline_mode<synchronous>, transform_indices = @transform_4, window_bounds = array<i64: 8, 216>}, {transform_indices = @transform_5, window_bounds = array<i64: 1, 1, 8, 128>}, {transform_indices = @transform_6, window_bounds = array<i64: 1, 1, 8, 2>}]} {
    %c1_i32 = arith.constant 1 : i32
    %0 = arith.cmpi sge, %arg1, %c1_i32 : i32
    %c8_i32 = arith.constant 8 : i32
    %1 = arith.cmpi sle, %arg1, %c8_i32 : i32
    %2 = arith.andi %0, %1 : i1
    %3 = arith.extui %2 : i1 to i32
    %c0_i32 = arith.constant 0 : i32
    %4 = arith.cmpi ne, %3, %c0_i32 : i32
    scf.if %4 {
      %c0 = arith.constant 0 : index
      %c0_1 = arith.constant 0 : index
      %8 = vector.load %arg5[%c0, %c0_1] : memref<1x128xf32, #tpu.memory_space<vmem>>, vector<1x128xf32>
      %c1_i32_2 = arith.constant 1 : i32
      %9 = arith.subi %arg1, %c1_i32_2 : i32
      %c0_i32_3 = arith.constant 0 : i32
      %10 = arith.addi %9, %c0_i32_3 : i32
      %c0_4 = arith.constant 0 : index
      %11 = arith.index_cast %10 : i32 to index
      %c0_5 = arith.constant 0 : index
      %c0_6 = arith.constant 0 : index
      %12 = vector.load %arg2[%c0_4, %11, %c0_5, %c0_6] : memref<1x10x8x128xbf16, #tpu.memory_space<vmem>>, vector<1x1x8x128xbf16>
      %13 = vector.shape_cast %12 : vector<1x1x8x128xbf16> to vector<8x128xbf16>
      %14 = arith.extf %13 : vector<8x128xbf16> to vector<8x128xf32>
      %c11_i32 = arith.constant 11 : i32
      %15 = tpu.dynamic_rotate %14 by %c11_i32 dim 1 : vector<8x128xf32>, i32 -> vector<8x128xf32>
      %c0_7 = arith.constant 0 : index
      %c0_8 = arith.constant 0 : index
      %16 = vector.load %arg9[%c0_7, %c0_8] : memref<216x128xf32, #tpu.memory_space<vmem>>, vector<8x128xf32>
      tpu.vector_store %arg9[%c0_7, %c0_8], %15 {strides = array<i32>} : memref<216x128xf32, #tpu.memory_space<vmem>>, vector<8x128xf32>,
      %c10_i32 = arith.constant 10 : i32
      %17 = tpu.dynamic_rotate %14 by %c10_i32 dim 1 : vector<8x128xf32>, i32 -> vector<8x128xf32>
      %c8 = arith.constant 8 : index
      %c0_9 = arith.constant 0 : index
      %18 = vector.load %arg9[%c8, %c0_9] : memref<216x128xf32, #tpu.memory_space<vmem>>, vector<8x128xf32>
      tpu.vector_store %arg9[%c8, %c0_9], %17 {strides = array<i32>} : memref<216x128xf32, #tpu.memory_space<vmem>>, vector<8x128xf32>,
      %c9_i32 = arith.constant 9 : i32
      %19 = tpu.dynamic_rotate %14 by %c9_i32 dim 1 : vector<8x128xf32>, i32 -> vector<8x128xf32>
      %c16 = arith.constant 16 : index
      %c0_10 = arith.constant 0 : index
      %20 = vector.load %arg9[%c16, %c0_10] : memref<216x128xf32, #tpu.memory_space<vmem>>, vector<8x128xf32>
      tpu.vector_store %arg9[%c16, %c0_10], %19 {strides = array<i32>} : memref<216x128xf32, #tpu.memory_space<vmem>>, vector<8x128xf32>,
      %c1_i32_11 = arith.constant 1 : i32
      %21 = tpu.dynamic_rotate %14 by %c1_i32_11 dim 1 : vector<8x128xf32>, i32 -> vector<8x128xf32>
      %c24 = arith.constant 24 : index
      %c0_12 = arith.constant 0 : index
      %22 = vector.load %arg9[%c24, %c0_12] : memref<216x128xf32, #tpu.memory_space<vmem>>, vector<8x128xf32>
      tpu.vector_store %arg9[%c24, %c0_12], %21 {strides = array<i32>} : memref<216x128xf32, #tpu.memory_space<vmem>>, vector<8x128xf32>,
      %c32 = arith.constant 32 : index
      %c0_13 = arith.constant 0 : index
      %23 = vector.load %arg9[%c32, %c0_13] : memref<216x128xf32, #tpu.memory_space<vmem>>, vector<8x128xf32>
      tpu.vector_store %arg9[%c32, %c0_13], %14 {strides = array<i32>} : memref<216x128xf32, #tpu.memory_space<vmem>>, vector<8x128xf32>,
      %c127_i32 = arith.constant 127 : i32
      %24 = tpu.dynamic_rotate %14 by %c127_i32 dim 1 : vector<8x128xf32>, i32 -> vector<8x128xf32>
      %c40 = arith.constant 40 : index
      %c0_14 = arith.constant 0 : index
      %25 = vector.load %arg9[%c40, %c0_14] : memref<216x128xf32, #tpu.memory_space<vmem>>, vector<8x128xf32>
      tpu.vector_store %arg9[%c40, %c0_14], %24 {strides = array<i32>} : memref<216x128xf32, #tpu.memory_space<vmem>>, vector<8x128xf32>,
      %c119_i32 = arith.constant 119 : i32
      %26 = tpu.dynamic_rotate %14 by %c119_i32 dim 1 : vector<8x128xf32>, i32 -> vector<8x128xf32>
      %c48 = arith.constant 48 : index
      %c0_15 = arith.constant 0 : index
      %27 = vector.load %arg9[%c48, %c0_15] : memref<216x128xf32, #tpu.memory_space<vmem>>, vector<8x128xf32>
      tpu.vector_store %arg9[%c48, %c0_15], %26 {strides = array<i32>} : memref<216x128xf32, #tpu.memory_space<vmem>>, vector<8x128xf32>,
      %c118_i32 = arith.constant 118 : i32
      %28 = tpu.dynamic_rotate %14 by %c118_i32 dim 1 : vector<8x128xf32>, i32 -> vector<8x128xf32>
      %c56 = arith.constant 56 : index
      %c0_16 = arith.constant 0 : index
      %29 = vector.load %arg9[%c56, %c0_16] : memref<216x128xf32, #tpu.memory_space<vmem>>, vector<8x128xf32>
      tpu.vector_store %arg9[%c56, %c0_16], %28 {strides = array<i32>} : memref<216x128xf32, #tpu.memory_space<vmem>>, vector<8x128xf32>,
      %c117_i32 = arith.constant 117 : i32
      %30 = tpu.dynamic_rotate %14 by %c117_i32 dim 1 : vector<8x128xf32>, i32 -> vector<8x128xf32>
      %c64 = arith.constant 64 : index
      %c0_17 = arith.constant 0 : index
      %31 = vector.load %arg9[%c64, %c0_17] : memref<216x128xf32, #tpu.memory_space<vmem>>, vector<8x128xf32>
      tpu.vector_store %arg9[%c64, %c0_17], %30 {strides = array<i32>} : memref<216x128xf32, #tpu.memory_space<vmem>>, vector<8x128xf32>,
      %c1_i32_18 = arith.constant 1 : i32
      %32 = arith.subi %arg1, %c1_i32_18 : i32
      %c1_i32_19 = arith.constant 1 : i32
      %33 = arith.addi %32, %c1_i32_19 : i32
      %c0_20 = arith.constant 0 : index
      %34 = arith.index_cast %33 : i32 to index
      %c0_21 = arith.constant 0 : index
      %c0_22 = arith.constant 0 : index
      %35 = vector.load %arg2[%c0_20, %34, %c0_21, %c0_22] : memref<1x10x8x128xbf16, #tpu.memory_space<vmem>>, vector<1x1x8x128xbf16>
      %36 = vector.shape_cast %35 : vector<1x1x8x128xbf16> to vector<8x128xbf16>
      %37 = arith.extf %36 : vector<8x128xbf16> to vector<8x128xf32>
      %c11_i32_23 = arith.constant 11 : i32
      %38 = tpu.dynamic_rotate %37 by %c11_i32_23 dim 1 : vector<8x128xf32>, i32 -> vector<8x128xf32>
      %c72 = arith.constant 72 : index
      %c0_24 = arith.constant 0 : index
      %39 = vector.load %arg9[%c72, %c0_24] : memref<216x128xf32, #tpu.memory_space<vmem>>, vector<8x128xf32>
      tpu.vector_store %arg9[%c72, %c0_24], %38 {strides = array<i32>} : memref<216x128xf32, #tpu.memory_space<vmem>>, vector<8x128xf32>,
      %c10_i32_25 = arith.constant 10 : i32
      %40 = tpu.dynamic_rotate %37 by %c10_i32_25 dim 1 : vector<8x128xf32>, i32 -> vector<8x128xf32>
      %c80 = arith.constant 80 : index
      %c0_26 = arith.constant 0 : index
      %41 = vector.load %arg9[%c80, %c0_26] : memref<216x128xf32, #tpu.memory_space<vmem>>, vector<8x128xf32>
      tpu.vector_store %arg9[%c80, %c0_26], %40 {strides = array<i32>} : memref<216x128xf32, #tpu.memory_space<vmem>>, vector<8x128xf32>,
      %c9_i32_27 = arith.constant 9 : i32
      %42 = tpu.dynamic_rotate %37 by %c9_i32_27 dim 1 : vector<8x128xf32>, i32 -> vector<8x128xf32>
      %c88 = arith.constant 88 : index
      %c0_28 = arith.constant 0 : index
      %43 = vector.load %arg9[%c88, %c0_28] : memref<216x128xf32, #tpu.memory_space<vmem>>, vector<8x128xf32>
      tpu.vector_store %arg9[%c88, %c0_28], %42 {strides = array<i32>} : memref<216x128xf32, #tpu.memory_space<vmem>>, vector<8x128xf32>,
      %c1_i32_29 = arith.constant 1 : i32
      %44 = tpu.dynamic_rotate %37 by %c1_i32_29 dim 1 : vector<8x128xf32>, i32 -> vector<8x128xf32>
      %c96 = arith.constant 96 : index
      %c0_30 = arith.constant 0 : index
      %45 = vector.load %arg9[%c96, %c0_30] : memref<216x128xf32, #tpu.memory_space<vmem>>, vector<8x128xf32>
      tpu.vector_store %arg9[%c96, %c0_30], %44 {strides = array<i32>} : memref<216x128xf32, #tpu.memory_space<vmem>>, vector<8x128xf32>,
      %c104 = arith.constant 104 : index
      %c0_31 = arith.constant 0 : index
      %46 = vector.load %arg9[%c104, %c0_31] : memref<216x128xf32, #tpu.memory_space<vmem>>, vector<8x128xf32>
      tpu.vector_store %arg9[%c104, %c0_31], %37 {strides = array<i32>} : memref<216x128xf32, #tpu.memory_space<vmem>>, vector<8x128xf32>,
      %c127_i32_32 = arith.constant 127 : i32
      %47 = tpu.dynamic_rotate %37 by %c127_i32_32 dim 1 : vector<8x128xf32>, i32 -> vector<8x128xf32>
      %c112 = arith.constant 112 : index
      %c0_33 = arith.constant 0 : index
      %48 = vector.load %arg9[%c112, %c0_33] : memref<216x128xf32, #tpu.memory_space<vmem>>, vector<8x128xf32>
      tpu.vector_store %arg9[%c112, %c0_33], %47 {strides = array<i32>} : memref<216x128xf32, #tpu.memory_space<vmem>>, vector<8x128xf32>,
      %c119_i32_34 = arith.constant 119 : i32
      %49 = tpu.dynamic_rotate %37 by %c119_i32_34 dim 1 : vector<8x128xf32>, i32 -> vector<8x128xf32>
      %c120 = arith.constant 120 : index
      %c0_35 = arith.constant 0 : index
      %50 = vector.load %arg9[%c120, %c0_35] : memref<216x128xf32, #tpu.memory_space<vmem>>, vector<8x128xf32>
      tpu.vector_store %arg9[%c120, %c0_35], %49 {strides = array<i32>} : memref<216x128xf32, #tpu.memory_space<vmem>>, vector<8x128xf32>,
      %c118_i32_36 = arith.constant 118 : i32
      %51 = tpu.dynamic_rotate %37 by %c118_i32_36 dim 1 : vector<8x128xf32>, i32 -> vector<8x128xf32>
      %c128 = arith.constant 128 : index
      %c0_37 = arith.constant 0 : index
      %52 = vector.load %arg9[%c128, %c0_37] : memref<216x128xf32, #tpu.memory_space<vmem>>, vector<8x128xf32>
      tpu.vector_store %arg9[%c128, %c0_37], %51 {strides = array<i32>} : memref<216x128xf32, #tpu.memory_space<vmem>>, vector<8x128xf32>,
      %c117_i32_38 = arith.constant 117 : i32
      %53 = tpu.dynamic_rotate %37 by %c117_i32_38 dim 1 : vector<8x128xf32>, i32 -> vector<8x128xf32>
      %c136 = arith.constant 136 : index
      %c0_39 = arith.constant 0 : index
      %54 = vector.load %arg9[%c136, %c0_39] : memref<216x128xf32, #tpu.memory_space<vmem>>, vector<8x128xf32>
      tpu.vector_store %arg9[%c136, %c0_39], %53 {strides = array<i32>} : memref<216x128xf32, #tpu.memory_space<vmem>>, vector<8x128xf32>,
      %c1_i32_40 = arith.constant 1 : i32
      %55 = arith.subi %arg1, %c1_i32_40 : i32
      %c2_i32 = arith.constant 2 : i32
      %56 = arith.addi %55, %c2_i32 : i32
      %c0_41 = arith.constant 0 : index
      %57 = arith.index_cast %56 : i32 to index
      %c0_42 = arith.constant 0 : index
      %c0_43 = arith.constant 0 : index
      %58 = vector.load %arg2[%c0_41, %57, %c0_42, %c0_43] : memref<1x10x8x128xbf16, #tpu.memory_space<vmem>>, vector<1x1x8x128xbf16>
      %59 = vector.shape_cast %58 : vector<1x1x8x128xbf16> to vector<8x128xbf16>
      %60 = arith.extf %59 : vector<8x128xbf16> to vector<8x128xf32>
      %c11_i32_44 = arith.constant 11 : i32
      %61 = tpu.dynamic_rotate %60 by %c11_i32_44 dim 1 : vector<8x128xf32>, i32 -> vector<8x128xf32>
      %c144 = arith.constant 144 : index
      %c0_45 = arith.constant 0 : index
      %62 = vector.load %arg9[%c144, %c0_45] : memref<216x128xf32, #tpu.memory_space<vmem>>, vector<8x128xf32>
      tpu.vector_store %arg9[%c144, %c0_45], %61 {strides = array<i32>} : memref<216x128xf32, #tpu.memory_space<vmem>>, vector<8x128xf32>,
      %c10_i32_46 = arith.constant 10 : i32
      %63 = tpu.dynamic_rotate %60 by %c10_i32_46 dim 1 : vector<8x128xf32>, i32 -> vector<8x128xf32>
      %c152 = arith.constant 152 : index
      %c0_47 = arith.constant 0 : index
      %64 = vector.load %arg9[%c152, %c0_47] : memref<216x128xf32, #tpu.memory_space<vmem>>, vector<8x128xf32>
      tpu.vector_store %arg9[%c152, %c0_47], %63 {strides = array<i32>} : memref<216x128xf32, #tpu.memory_space<vmem>>, vector<8x128xf32>,
      %c9_i32_48 = arith.constant 9 : i32
      %65 = tpu.dynamic_rotate %60 by %c9_i32_48 dim 1 : vector<8x128xf32>, i32 -> vector<8x128xf32>
      %c160 = arith.constant 160 : index
      %c0_49 = arith.constant 0 : index
      %66 = vector.load %arg9[%c160, %c0_49] : memref<216x128xf32, #tpu.memory_space<vmem>>, vector<8x128xf32>
      tpu.vector_store %arg9[%c160, %c0_49], %65 {strides = array<i32>} : memref<216x128xf32, #tpu.memory_space<vmem>>, vector<8x128xf32>,
      %c1_i32_50 = arith.constant 1 : i32
      %67 = tpu.dynamic_rotate %60 by %c1_i32_50 dim 1 : vector<8x128xf32>, i32 -> vector<8x128xf32>
      %c168 = arith.constant 168 : index
      %c0_51 = arith.constant 0 : index
      %68 = vector.load %arg9[%c168, %c0_51] : memref<216x128xf32, #tpu.memory_space<vmem>>, vector<8x128xf32>
      tpu.vector_store %arg9[%c168, %c0_51], %67 {strides = array<i32>} : memref<216x128xf32, #tpu.memory_space<vmem>>, vector<8x128xf32>,
      %c176 = arith.constant 176 : index
      %c0_52 = arith.constant 0 : index
      %69 = vector.load %arg9[%c176, %c0_52] : memref<216x128xf32, #tpu.memory_space<vmem>>, vector<8x128xf32>
      tpu.vector_store %arg9[%c176, %c0_52], %60 {strides = array<i32>} : memref<216x128xf32, #tpu.memory_space<vmem>>, vector<8x128xf32>,
      %c127_i32_53 = arith.constant 127 : i32
      %70 = tpu.dynamic_rotate %60 by %c127_i32_53 dim 1 : vector<8x128xf32>, i32 -> vector<8x128xf32>
      %c184 = arith.constant 184 : index
      %c0_54 = arith.constant 0 : index
      %71 = vector.load %arg9[%c184, %c0_54] : memref<216x128xf32, #tpu.memory_space<vmem>>, vector<8x128xf32>
      tpu.vector_store %arg9[%c184, %c0_54], %70 {strides = array<i32>} : memref<216x128xf32, #tpu.memory_space<vmem>>, vector<8x128xf32>,
      %c119_i32_55 = arith.constant 119 : i32
      %72 = tpu.dynamic_rotate %60 by %c119_i32_55 dim 1 : vector<8x128xf32>, i32 -> vector<8x128xf32>
      %c192 = arith.constant 192 : index
      %c0_56 = arith.constant 0 : index
      %73 = vector.load %arg9[%c192, %c0_56] : memref<216x128xf32, #tpu.memory_space<vmem>>, vector<8x128xf32>
      tpu.vector_store %arg9[%c192, %c0_56], %72 {strides = array<i32>} : memref<216x128xf32, #tpu.memory_space<vmem>>, vector<8x128xf32>,
      %c118_i32_57 = arith.constant 118 : i32
      %74 = tpu.dynamic_rotate %60 by %c118_i32_57 dim 1 : vector<8x128xf32>, i32 -> vector<8x128xf32>
      %c200 = arith.constant 200 : index
      %c0_58 = arith.constant 0 : index
      %75 = vector.load %arg9[%c200, %c0_58] : memref<216x128xf32, #tpu.memory_space<vmem>>, vector<8x128xf32>
      tpu.vector_store %arg9[%c200, %c0_58], %74 {strides = array<i32>} : memref<216x128xf32, #tpu.memory_space<vmem>>, vector<8x128xf32>,
      %c117_i32_59 = arith.constant 117 : i32
      %76 = tpu.dynamic_rotate %60 by %c117_i32_59 dim 1 : vector<8x128xf32>, i32 -> vector<8x128xf32>
      %c208 = arith.constant 208 : index
      %c0_60 = arith.constant 0 : index
      %77 = vector.load %arg9[%c208, %c0_60] : memref<216x128xf32, #tpu.memory_space<vmem>>, vector<8x128xf32>
      tpu.vector_store %arg9[%c208, %c0_60], %76 {strides = array<i32>} : memref<216x128xf32, #tpu.memory_space<vmem>>, vector<8x128xf32>,
      %c0_61 = arith.constant 0 : index
      %c0_62 = arith.constant 0 : index
      %78 = vector.load %arg6[%c0_61, %c0_62] : memref<8x216xf32, #tpu.memory_space<vmem>>, vector<8x216xf32>
      %c0_63 = arith.constant 0 : index
      %c0_64 = arith.constant 0 : index
      %79 = vector.load %arg9[%c0_63, %c0_64] : memref<216x128xf32, #tpu.memory_space<vmem>>, vector<216x128xf32>
      %cst = arith.constant dense<0.000000e+00> : vector<8x128xf32>
      %80 = tpu.matmul %78, %79, %cst {dimension_numbers = #tpu.dot_dimension_numbers<[1], [0], [0], [1], [0, 0, 1, 1], [], []>} : vector<8x216xf32>, vector<216x128xf32>, vector<8x128xf32> -> vector<8x128xf32>
      %81 = vector.broadcast %8 : vector<1x128xf32> to vector<8x128xf32>
      %82 = arith.mulf %80, %81 : vector<8x128xf32>
      %83 = arith.truncf %82 : vector<8x128xf32> to vector<8x128xbf16>
      %c0_65 = arith.constant 0 : index
      %c0_66 = arith.constant 0 : index
      %c0_67 = arith.constant 0 : index
      %c0_68 = arith.constant 0 : index
      %84 = vector.load %arg7[%c0_65, %c0_66, %c0_67, %c0_68] : memref<1x1x8x128xbf16, #tpu.memory_space<vmem>>, vector<1x1x8x128xbf16>
      %85 = vector.shape_cast %84 : vector<1x1x8x128xbf16> to vector<8x128xbf16>
      %86 = vector.shape_cast %83 : vector<8x128xbf16> to vector<1x1x8x128xbf16>
      tpu.vector_store %arg7[%c0_65, %c0_66, %c0_67, %c0_68], %86 {strides = array<i32>} : memref<1x1x8x128xbf16, #tpu.memory_space<vmem>>, vector<1x1x8x128xbf16>,
      %cst_69 = arith.constant dense<0.000000e+00> : vector<8xf32>
      %87 = vector.multi_reduction <add>, %82, %cst_69 [1] : vector<8x128xf32> to vector<8xf32>
      %88 = vector.shape_cast %87 : vector<8xf32> to vector<8x1xf32>
      %c0_70 = arith.constant 0 : index
      %c0_71 = arith.constant 0 : index
      %c0_72 = arith.constant 0 : index
      %c0_73 = arith.constant 0 : index
      %89 = vector.load %arg8[%c0_70, %c0_71, %c0_72, %c0_73] : memref<1x1x8x2xf32, #tpu.memory_space<vmem>>, vector<1x1x8x1xf32>
      %90 = vector.shape_cast %89 : vector<1x1x8x1xf32> to vector<8x1xf32>
      %91 = vector.shape_cast %88 : vector<8x1xf32> to vector<1x1x8x1xf32>
      tpu.vector_store %arg8[%c0_70, %c0_71, %c0_72, %c0_73], %91 {strides = array<i32>} : memref<1x1x8x2xf32, #tpu.memory_space<vmem>>, vector<1x1x8x1xf32>,
      %92 = arith.mulf %82, %82 : vector<8x128xf32>
      %cst_74 = arith.constant dense<0.000000e+00> : vector<8xf32>
      %93 = vector.multi_reduction <add>, %92, %cst_74 [1] : vector<8x128xf32> to vector<8xf32>
      %94 = vector.shape_cast %93 : vector<8xf32> to vector<8x1xf32>
      %c0_75 = arith.constant 0 : index
      %c0_76 = arith.constant 0 : index
      %c0_77 = arith.constant 0 : index
      %c1 = arith.constant 1 : index
      %95 = vector.load %arg8[%c0_75, %c0_76, %c0_77, %c1] : memref<1x1x8x2xf32, #tpu.memory_space<vmem>>, vector<1x1x8x1xf32>
      %96 = vector.shape_cast %95 : vector<1x1x8x1xf32> to vector<8x1xf32>
      %97 = vector.shape_cast %94 : vector<8x1xf32> to vector<1x1x8x1xf32>
      tpu.vector_store %arg8[%c0_75, %c0_76, %c0_77, %c1], %97 {strides = array<i32>} : memref<1x1x8x2xf32, #tpu.memory_space<vmem>>, vector<1x1x8x1xf32>,
    } else {
    }
    %true = arith.constant true
    %5 = arith.xori %2, %true : i1
    %6 = arith.extui %5 : i1 to i32
    %c0_i32_0 = arith.constant 0 : i32
    %7 = arith.cmpi ne, %6, %c0_i32_0 : i32
    scf.if %7 {
      %cst = arith.constant 0.000000e+00 : bf16
      %8 = vector.broadcast %cst : bf16 to vector<1x1x8x128xbf16>
      %c0 = arith.constant 0 : index
      %c0_1 = arith.constant 0 : index
      %c0_2 = arith.constant 0 : index
      %c0_3 = arith.constant 0 : index
      %9 = vector.load %arg7[%c0, %c0_1, %c0_2, %c0_3] : memref<1x1x8x128xbf16, #tpu.memory_space<vmem>>, vector<1x1x8x128xbf16>
      tpu.vector_store %arg7[%c0, %c0_1, %c0_2, %c0_3], %8 {strides = array<i32>} : memref<1x1x8x128xbf16, #tpu.memory_space<vmem>>, vector<1x1x8x128xbf16>,
      %cst_4 = arith.constant 0.000000e+00 : f32
      %10 = vector.broadcast %cst_4 : f32 to vector<1x1x8x2xf32>
      %c0_5 = arith.constant 0 : index
      %c0_6 = arith.constant 0 : index
      %c0_7 = arith.constant 0 : index
      %c0_8 = arith.constant 0 : index
      %11 = vector.load %arg8[%c0_5, %c0_6, %c0_7, %c0_8] : memref<1x1x8x2xf32, #tpu.memory_space<vmem>>, vector<1x1x8x2xf32>
      tpu.vector_store %arg8[%c0_5, %c0_6, %c0_7, %c0_8], %10 {strides = array<i32>} : memref<1x1x8x2xf32, #tpu.memory_space<vmem>>, vector<1x1x8x2xf32>,
    } else {
    }
    return
  }
  func.func @transform_0(%arg0: i32, %arg1: i32) -> (i32, i32, i32, i32) {
    %c0_i32 = arith.constant 0 : i32
    %c0_i32_0 = arith.constant 0 : i32
    %c0_i32_1 = arith.constant 0 : i32
    %c0_i32_2 = arith.constant 0 : i32
    return %arg0, %c0_i32, %c0_i32_0, %c0_i32_1 : i32, i32, i32, i32
  }
  func.func @transform_1(%arg0: i32, %arg1: i32) -> (i32, i32) {
    %c0_i32 = arith.constant 0 : i32
    %c0_i32_0 = arith.constant 0 : i32
    %c0_i32_1 = arith.constant 0 : i32
    return %c0_i32, %c0_i32_0 : i32, i32
  }
  func.func @transform_2(%arg0: i32, %arg1: i32) -> (i32, i32) {
    %c0_i32 = arith.constant 0 : i32
    %c0_i32_0 = arith.constant 0 : i32
    %c0_i32_1 = arith.constant 0 : i32
    return %c0_i32, %c0_i32_0 : i32, i32
  }
  func.func @transform_3(%arg0: i32, %arg1: i32) -> (i32, i32) {
    %c0_i32 = arith.constant 0 : i32
    %c0_i32_0 = arith.constant 0 : i32
    %c0_i32_1 = arith.constant 0 : i32
    return %c0_i32, %c0_i32_0 : i32, i32
  }
  func.func @transform_4(%arg0: i32, %arg1: i32) -> (i32, i32) {
    %c0_i32 = arith.constant 0 : i32
    %c0_i32_0 = arith.constant 0 : i32
    %c0_i32_1 = arith.constant 0 : i32
    return %c0_i32, %c0_i32_0 : i32, i32
  }
  func.func @transform_5(%arg0: i32, %arg1: i32) -> (i32, i32, i32, i32) {
    %c0_i32 = arith.constant 0 : i32
    %c0_i32_0 = arith.constant 0 : i32
    %c0_i32_1 = arith.constant 0 : i32
    return %arg0, %arg1, %c0_i32, %c0_i32_0 : i32, i32, i32, i32
  }
  func.func @transform_6(%arg0: i32, %arg1: i32) -> (i32, i32, i32, i32) {
    %c0_i32 = arith.constant 0 : i32
    %c0_i32_0 = arith.constant 0 : i32
    %c0_i32_1 = arith.constant 0 : i32
    return %arg0, %arg1, %c0_i32, %c0_i32_0 : i32, i32, i32, i32
  }
}

module attributes {stable_mosaic.version = 11 : i64} {
  func.func @_conv3_kernel(%arg0: i32, %arg1: i32, %arg2: memref<1x10x8x128xbf16, #tpu.memory_space<vmem>>, %arg3: memref<8x1xf32, #tpu.memory_space<vmem>>, %arg4: memref<8x1xf32, #tpu.memory_space<vmem>>, %arg5: memref<1x128xf32, #tpu.memory_space<vmem>>, %arg6: memref<4x216xf32, #tpu.memory_space<vmem>>, %arg7: memref<1x1x4x128xbf16, #tpu.memory_space<vmem>>, %arg8: memref<1x1x4x2xf32, #tpu.memory_space<vmem>>, %arg9: memref<216x128xf32, #tpu.memory_space<vmem>>) attributes {dimension_semantics = [#tpu.dimension_semantics<parallel>, #tpu.dimension_semantics<parallel>], iteration_bounds = array<i64: 1, 10>, scalar_prefetch = 0 : i64, scratch_operands = 1 : i64, tpu.core_type = #tpu.core_type<tc>, window_params = [{transform_indices = @transform_0, window_bounds = array<i64: 1, 10, 8, 128>}, {pipeline_mode = #tpu.pipeline_mode<synchronous>, transform_indices = @transform_1, window_bounds = array<i64: 8, 1>}, {pipeline_mode = #tpu.pipeline_mode<synchronous>, transform_indices = @transform_2, window_bounds = array<i64: 8, 1>}, {pipeline_mode = #tpu.pipeline_mode<synchronous>, transform_indices = @transform_3, window_bounds = array<i64: 1, 128>}, {pipeline_mode = #tpu.pipeline_mode<synchronous>, transform_indices = @transform_4, window_bounds = array<i64: 4, 216>}, {transform_indices = @transform_5, window_bounds = array<i64: 1, 1, 4, 128>}, {transform_indices = @transform_6, window_bounds = array<i64: 1, 1, 4, 2>}]} {
    %c1_i32 = arith.constant 1 : i32
    %0 = arith.cmpi sge, %arg1, %c1_i32 : i32
    %c8_i32 = arith.constant 8 : i32
    %1 = arith.cmpi sle, %arg1, %c8_i32 : i32
    %2 = arith.andi %0, %1 : i1
    %3 = arith.extui %2 : i1 to i32
    %c0_i32 = arith.constant 0 : i32
    %4 = arith.cmpi ne, %3, %c0_i32 : i32
    scf.if %4 {
      %c0 = arith.constant 0 : index
      %c0_1 = arith.constant 0 : index
      %8 = vector.load %arg5[%c0, %c0_1] : memref<1x128xf32, #tpu.memory_space<vmem>>, vector<1x128xf32>
      %c1_i32_2 = arith.constant 1 : i32
      %9 = arith.subi %arg1, %c1_i32_2 : i32
      %c0_i32_3 = arith.constant 0 : i32
      %10 = arith.addi %9, %c0_i32_3 : i32
      %c0_4 = arith.constant 0 : index
      %11 = arith.index_cast %10 : i32 to index
      %c0_5 = arith.constant 0 : index
      %c0_6 = arith.constant 0 : index
      %12 = vector.load %arg2[%c0_4, %11, %c0_5, %c0_6] : memref<1x10x8x128xbf16, #tpu.memory_space<vmem>>, vector<1x1x8x128xbf16>
      %13 = vector.shape_cast %12 : vector<1x1x8x128xbf16> to vector<8x128xbf16>
      %14 = arith.extf %13 : vector<8x128xbf16> to vector<8x128xf32>
      %c0_7 = arith.constant 0 : index
      %c0_8 = arith.constant 0 : index
      %15 = vector.load %arg3[%c0_7, %c0_8] : memref<8x1xf32, #tpu.memory_space<vmem>>, vector<8x1xf32>
      %16 = vector.broadcast %15 : vector<8x1xf32> to vector<8x128xf32>
      %17 = arith.mulf %14, %16 : vector<8x128xf32>
      %c0_9 = arith.constant 0 : index
      %c0_10 = arith.constant 0 : index
      %18 = vector.load %arg4[%c0_9, %c0_10] : memref<8x1xf32, #tpu.memory_space<vmem>>, vector<8x1xf32>
      %19 = vector.broadcast %18 : vector<8x1xf32> to vector<8x128xf32>
      %20 = arith.addf %17, %19 : vector<8x128xf32>
      %cst = arith.constant 0.000000e+00 : f32
      %21 = vector.broadcast %cst : f32 to vector<8x128xf32>
      %22 = arith.maximumf %20, %21 : vector<8x128xf32>
      %23 = vector.broadcast %8 : vector<1x128xf32> to vector<8x128xf32>
      %24 = arith.mulf %22, %23 : vector<8x128xf32>
      %c11_i32 = arith.constant 11 : i32
      %25 = tpu.dynamic_rotate %24 by %c11_i32 dim 1 : vector<8x128xf32>, i32 -> vector<8x128xf32>
      %c0_11 = arith.constant 0 : index
      %c0_12 = arith.constant 0 : index
      %26 = vector.load %arg9[%c0_11, %c0_12] : memref<216x128xf32, #tpu.memory_space<vmem>>, vector<8x128xf32>
      tpu.vector_store %arg9[%c0_11, %c0_12], %25 {strides = array<i32>} : memref<216x128xf32, #tpu.memory_space<vmem>>, vector<8x128xf32>,
      %c10_i32 = arith.constant 10 : i32
      %27 = tpu.dynamic_rotate %24 by %c10_i32 dim 1 : vector<8x128xf32>, i32 -> vector<8x128xf32>
      %c8 = arith.constant 8 : index
      %c0_13 = arith.constant 0 : index
      %28 = vector.load %arg9[%c8, %c0_13] : memref<216x128xf32, #tpu.memory_space<vmem>>, vector<8x128xf32>
      tpu.vector_store %arg9[%c8, %c0_13], %27 {strides = array<i32>} : memref<216x128xf32, #tpu.memory_space<vmem>>, vector<8x128xf32>,
      %c9_i32 = arith.constant 9 : i32
      %29 = tpu.dynamic_rotate %24 by %c9_i32 dim 1 : vector<8x128xf32>, i32 -> vector<8x128xf32>
      %c16 = arith.constant 16 : index
      %c0_14 = arith.constant 0 : index
      %30 = vector.load %arg9[%c16, %c0_14] : memref<216x128xf32, #tpu.memory_space<vmem>>, vector<8x128xf32>
      tpu.vector_store %arg9[%c16, %c0_14], %29 {strides = array<i32>} : memref<216x128xf32, #tpu.memory_space<vmem>>, vector<8x128xf32>,
      %c1_i32_15 = arith.constant 1 : i32
      %31 = tpu.dynamic_rotate %24 by %c1_i32_15 dim 1 : vector<8x128xf32>, i32 -> vector<8x128xf32>
      %c24 = arith.constant 24 : index
      %c0_16 = arith.constant 0 : index
      %32 = vector.load %arg9[%c24, %c0_16] : memref<216x128xf32, #tpu.memory_space<vmem>>, vector<8x128xf32>
      tpu.vector_store %arg9[%c24, %c0_16], %31 {strides = array<i32>} : memref<216x128xf32, #tpu.memory_space<vmem>>, vector<8x128xf32>,
      %c32 = arith.constant 32 : index
      %c0_17 = arith.constant 0 : index
      %33 = vector.load %arg9[%c32, %c0_17] : memref<216x128xf32, #tpu.memory_space<vmem>>, vector<8x128xf32>
      tpu.vector_store %arg9[%c32, %c0_17], %24 {strides = array<i32>} : memref<216x128xf32, #tpu.memory_space<vmem>>, vector<8x128xf32>,
      %c127_i32 = arith.constant 127 : i32
      %34 = tpu.dynamic_rotate %24 by %c127_i32 dim 1 : vector<8x128xf32>, i32 -> vector<8x128xf32>
      %c40 = arith.constant 40 : index
      %c0_18 = arith.constant 0 : index
      %35 = vector.load %arg9[%c40, %c0_18] : memref<216x128xf32, #tpu.memory_space<vmem>>, vector<8x128xf32>
      tpu.vector_store %arg9[%c40, %c0_18], %34 {strides = array<i32>} : memref<216x128xf32, #tpu.memory_space<vmem>>, vector<8x128xf32>,
      %c119_i32 = arith.constant 119 : i32
      %36 = tpu.dynamic_rotate %24 by %c119_i32 dim 1 : vector<8x128xf32>, i32 -> vector<8x128xf32>
      %c48 = arith.constant 48 : index
      %c0_19 = arith.constant 0 : index
      %37 = vector.load %arg9[%c48, %c0_19] : memref<216x128xf32, #tpu.memory_space<vmem>>, vector<8x128xf32>
      tpu.vector_store %arg9[%c48, %c0_19], %36 {strides = array<i32>} : memref<216x128xf32, #tpu.memory_space<vmem>>, vector<8x128xf32>,
      %c118_i32 = arith.constant 118 : i32
      %38 = tpu.dynamic_rotate %24 by %c118_i32 dim 1 : vector<8x128xf32>, i32 -> vector<8x128xf32>
      %c56 = arith.constant 56 : index
      %c0_20 = arith.constant 0 : index
      %39 = vector.load %arg9[%c56, %c0_20] : memref<216x128xf32, #tpu.memory_space<vmem>>, vector<8x128xf32>
      tpu.vector_store %arg9[%c56, %c0_20], %38 {strides = array<i32>} : memref<216x128xf32, #tpu.memory_space<vmem>>, vector<8x128xf32>,
      %c117_i32 = arith.constant 117 : i32
      %40 = tpu.dynamic_rotate %24 by %c117_i32 dim 1 : vector<8x128xf32>, i32 -> vector<8x128xf32>
      %c64 = arith.constant 64 : index
      %c0_21 = arith.constant 0 : index
      %41 = vector.load %arg9[%c64, %c0_21] : memref<216x128xf32, #tpu.memory_space<vmem>>, vector<8x128xf32>
      tpu.vector_store %arg9[%c64, %c0_21], %40 {strides = array<i32>} : memref<216x128xf32, #tpu.memory_space<vmem>>, vector<8x128xf32>,
      %c1_i32_22 = arith.constant 1 : i32
      %42 = arith.subi %arg1, %c1_i32_22 : i32
      %c1_i32_23 = arith.constant 1 : i32
      %43 = arith.addi %42, %c1_i32_23 : i32
      %c0_24 = arith.constant 0 : index
      %44 = arith.index_cast %43 : i32 to index
      %c0_25 = arith.constant 0 : index
      %c0_26 = arith.constant 0 : index
      %45 = vector.load %arg2[%c0_24, %44, %c0_25, %c0_26] : memref<1x10x8x128xbf16, #tpu.memory_space<vmem>>, vector<1x1x8x128xbf16>
      %46 = vector.shape_cast %45 : vector<1x1x8x128xbf16> to vector<8x128xbf16>
      %47 = arith.extf %46 : vector<8x128xbf16> to vector<8x128xf32>
      %c0_27 = arith.constant 0 : index
      %c0_28 = arith.constant 0 : index
      %48 = vector.load %arg3[%c0_27, %c0_28] : memref<8x1xf32, #tpu.memory_space<vmem>>, vector<8x1xf32>
      %49 = vector.broadcast %48 : vector<8x1xf32> to vector<8x128xf32>
      %50 = arith.mulf %47, %49 : vector<8x128xf32>
      %c0_29 = arith.constant 0 : index
      %c0_30 = arith.constant 0 : index
      %51 = vector.load %arg4[%c0_29, %c0_30] : memref<8x1xf32, #tpu.memory_space<vmem>>, vector<8x1xf32>
      %52 = vector.broadcast %51 : vector<8x1xf32> to vector<8x128xf32>
      %53 = arith.addf %50, %52 : vector<8x128xf32>
      %cst_31 = arith.constant 0.000000e+00 : f32
      %54 = vector.broadcast %cst_31 : f32 to vector<8x128xf32>
      %55 = arith.maximumf %53, %54 : vector<8x128xf32>
      %56 = vector.broadcast %8 : vector<1x128xf32> to vector<8x128xf32>
      %57 = arith.mulf %55, %56 : vector<8x128xf32>
      %c11_i32_32 = arith.constant 11 : i32
      %58 = tpu.dynamic_rotate %57 by %c11_i32_32 dim 1 : vector<8x128xf32>, i32 -> vector<8x128xf32>
      %c72 = arith.constant 72 : index
      %c0_33 = arith.constant 0 : index
      %59 = vector.load %arg9[%c72, %c0_33] : memref<216x128xf32, #tpu.memory_space<vmem>>, vector<8x128xf32>
      tpu.vector_store %arg9[%c72, %c0_33], %58 {strides = array<i32>} : memref<216x128xf32, #tpu.memory_space<vmem>>, vector<8x128xf32>,
      %c10_i32_34 = arith.constant 10 : i32
      %60 = tpu.dynamic_rotate %57 by %c10_i32_34 dim 1 : vector<8x128xf32>, i32 -> vector<8x128xf32>
      %c80 = arith.constant 80 : index
      %c0_35 = arith.constant 0 : index
      %61 = vector.load %arg9[%c80, %c0_35] : memref<216x128xf32, #tpu.memory_space<vmem>>, vector<8x128xf32>
      tpu.vector_store %arg9[%c80, %c0_35], %60 {strides = array<i32>} : memref<216x128xf32, #tpu.memory_space<vmem>>, vector<8x128xf32>,
      %c9_i32_36 = arith.constant 9 : i32
      %62 = tpu.dynamic_rotate %57 by %c9_i32_36 dim 1 : vector<8x128xf32>, i32 -> vector<8x128xf32>
      %c88 = arith.constant 88 : index
      %c0_37 = arith.constant 0 : index
      %63 = vector.load %arg9[%c88, %c0_37] : memref<216x128xf32, #tpu.memory_space<vmem>>, vector<8x128xf32>
      tpu.vector_store %arg9[%c88, %c0_37], %62 {strides = array<i32>} : memref<216x128xf32, #tpu.memory_space<vmem>>, vector<8x128xf32>,
      %c1_i32_38 = arith.constant 1 : i32
      %64 = tpu.dynamic_rotate %57 by %c1_i32_38 dim 1 : vector<8x128xf32>, i32 -> vector<8x128xf32>
      %c96 = arith.constant 96 : index
      %c0_39 = arith.constant 0 : index
      %65 = vector.load %arg9[%c96, %c0_39] : memref<216x128xf32, #tpu.memory_space<vmem>>, vector<8x128xf32>
      tpu.vector_store %arg9[%c96, %c0_39], %64 {strides = array<i32>} : memref<216x128xf32, #tpu.memory_space<vmem>>, vector<8x128xf32>,
      %c104 = arith.constant 104 : index
      %c0_40 = arith.constant 0 : index
      %66 = vector.load %arg9[%c104, %c0_40] : memref<216x128xf32, #tpu.memory_space<vmem>>, vector<8x128xf32>
      tpu.vector_store %arg9[%c104, %c0_40], %57 {strides = array<i32>} : memref<216x128xf32, #tpu.memory_space<vmem>>, vector<8x128xf32>,
      %c127_i32_41 = arith.constant 127 : i32
      %67 = tpu.dynamic_rotate %57 by %c127_i32_41 dim 1 : vector<8x128xf32>, i32 -> vector<8x128xf32>
      %c112 = arith.constant 112 : index
      %c0_42 = arith.constant 0 : index
      %68 = vector.load %arg9[%c112, %c0_42] : memref<216x128xf32, #tpu.memory_space<vmem>>, vector<8x128xf32>
      tpu.vector_store %arg9[%c112, %c0_42], %67 {strides = array<i32>} : memref<216x128xf32, #tpu.memory_space<vmem>>, vector<8x128xf32>,
      %c119_i32_43 = arith.constant 119 : i32
      %69 = tpu.dynamic_rotate %57 by %c119_i32_43 dim 1 : vector<8x128xf32>, i32 -> vector<8x128xf32>
      %c120 = arith.constant 120 : index
      %c0_44 = arith.constant 0 : index
      %70 = vector.load %arg9[%c120, %c0_44] : memref<216x128xf32, #tpu.memory_space<vmem>>, vector<8x128xf32>
      tpu.vector_store %arg9[%c120, %c0_44], %69 {strides = array<i32>} : memref<216x128xf32, #tpu.memory_space<vmem>>, vector<8x128xf32>,
      %c118_i32_45 = arith.constant 118 : i32
      %71 = tpu.dynamic_rotate %57 by %c118_i32_45 dim 1 : vector<8x128xf32>, i32 -> vector<8x128xf32>
      %c128 = arith.constant 128 : index
      %c0_46 = arith.constant 0 : index
      %72 = vector.load %arg9[%c128, %c0_46] : memref<216x128xf32, #tpu.memory_space<vmem>>, vector<8x128xf32>
      tpu.vector_store %arg9[%c128, %c0_46], %71 {strides = array<i32>} : memref<216x128xf32, #tpu.memory_space<vmem>>, vector<8x128xf32>,
      %c117_i32_47 = arith.constant 117 : i32
      %73 = tpu.dynamic_rotate %57 by %c117_i32_47 dim 1 : vector<8x128xf32>, i32 -> vector<8x128xf32>
      %c136 = arith.constant 136 : index
      %c0_48 = arith.constant 0 : index
      %74 = vector.load %arg9[%c136, %c0_48] : memref<216x128xf32, #tpu.memory_space<vmem>>, vector<8x128xf32>
      tpu.vector_store %arg9[%c136, %c0_48], %73 {strides = array<i32>} : memref<216x128xf32, #tpu.memory_space<vmem>>, vector<8x128xf32>,
      %c1_i32_49 = arith.constant 1 : i32
      %75 = arith.subi %arg1, %c1_i32_49 : i32
      %c2_i32 = arith.constant 2 : i32
      %76 = arith.addi %75, %c2_i32 : i32
      %c0_50 = arith.constant 0 : index
      %77 = arith.index_cast %76 : i32 to index
      %c0_51 = arith.constant 0 : index
      %c0_52 = arith.constant 0 : index
      %78 = vector.load %arg2[%c0_50, %77, %c0_51, %c0_52] : memref<1x10x8x128xbf16, #tpu.memory_space<vmem>>, vector<1x1x8x128xbf16>
      %79 = vector.shape_cast %78 : vector<1x1x8x128xbf16> to vector<8x128xbf16>
      %80 = arith.extf %79 : vector<8x128xbf16> to vector<8x128xf32>
      %c0_53 = arith.constant 0 : index
      %c0_54 = arith.constant 0 : index
      %81 = vector.load %arg3[%c0_53, %c0_54] : memref<8x1xf32, #tpu.memory_space<vmem>>, vector<8x1xf32>
      %82 = vector.broadcast %81 : vector<8x1xf32> to vector<8x128xf32>
      %83 = arith.mulf %80, %82 : vector<8x128xf32>
      %c0_55 = arith.constant 0 : index
      %c0_56 = arith.constant 0 : index
      %84 = vector.load %arg4[%c0_55, %c0_56] : memref<8x1xf32, #tpu.memory_space<vmem>>, vector<8x1xf32>
      %85 = vector.broadcast %84 : vector<8x1xf32> to vector<8x128xf32>
      %86 = arith.addf %83, %85 : vector<8x128xf32>
      %cst_57 = arith.constant 0.000000e+00 : f32
      %87 = vector.broadcast %cst_57 : f32 to vector<8x128xf32>
      %88 = arith.maximumf %86, %87 : vector<8x128xf32>
      %89 = vector.broadcast %8 : vector<1x128xf32> to vector<8x128xf32>
      %90 = arith.mulf %88, %89 : vector<8x128xf32>
      %c11_i32_58 = arith.constant 11 : i32
      %91 = tpu.dynamic_rotate %90 by %c11_i32_58 dim 1 : vector<8x128xf32>, i32 -> vector<8x128xf32>
      %c144 = arith.constant 144 : index
      %c0_59 = arith.constant 0 : index
      %92 = vector.load %arg9[%c144, %c0_59] : memref<216x128xf32, #tpu.memory_space<vmem>>, vector<8x128xf32>
      tpu.vector_store %arg9[%c144, %c0_59], %91 {strides = array<i32>} : memref<216x128xf32, #tpu.memory_space<vmem>>, vector<8x128xf32>,
      %c10_i32_60 = arith.constant 10 : i32
      %93 = tpu.dynamic_rotate %90 by %c10_i32_60 dim 1 : vector<8x128xf32>, i32 -> vector<8x128xf32>
      %c152 = arith.constant 152 : index
      %c0_61 = arith.constant 0 : index
      %94 = vector.load %arg9[%c152, %c0_61] : memref<216x128xf32, #tpu.memory_space<vmem>>, vector<8x128xf32>
      tpu.vector_store %arg9[%c152, %c0_61], %93 {strides = array<i32>} : memref<216x128xf32, #tpu.memory_space<vmem>>, vector<8x128xf32>,
      %c9_i32_62 = arith.constant 9 : i32
      %95 = tpu.dynamic_rotate %90 by %c9_i32_62 dim 1 : vector<8x128xf32>, i32 -> vector<8x128xf32>
      %c160 = arith.constant 160 : index
      %c0_63 = arith.constant 0 : index
      %96 = vector.load %arg9[%c160, %c0_63] : memref<216x128xf32, #tpu.memory_space<vmem>>, vector<8x128xf32>
      tpu.vector_store %arg9[%c160, %c0_63], %95 {strides = array<i32>} : memref<216x128xf32, #tpu.memory_space<vmem>>, vector<8x128xf32>,
      %c1_i32_64 = arith.constant 1 : i32
      %97 = tpu.dynamic_rotate %90 by %c1_i32_64 dim 1 : vector<8x128xf32>, i32 -> vector<8x128xf32>
      %c168 = arith.constant 168 : index
      %c0_65 = arith.constant 0 : index
      %98 = vector.load %arg9[%c168, %c0_65] : memref<216x128xf32, #tpu.memory_space<vmem>>, vector<8x128xf32>
      tpu.vector_store %arg9[%c168, %c0_65], %97 {strides = array<i32>} : memref<216x128xf32, #tpu.memory_space<vmem>>, vector<8x128xf32>,
      %c176 = arith.constant 176 : index
      %c0_66 = arith.constant 0 : index
      %99 = vector.load %arg9[%c176, %c0_66] : memref<216x128xf32, #tpu.memory_space<vmem>>, vector<8x128xf32>
      tpu.vector_store %arg9[%c176, %c0_66], %90 {strides = array<i32>} : memref<216x128xf32, #tpu.memory_space<vmem>>, vector<8x128xf32>,
      %c127_i32_67 = arith.constant 127 : i32
      %100 = tpu.dynamic_rotate %90 by %c127_i32_67 dim 1 : vector<8x128xf32>, i32 -> vector<8x128xf32>
      %c184 = arith.constant 184 : index
      %c0_68 = arith.constant 0 : index
      %101 = vector.load %arg9[%c184, %c0_68] : memref<216x128xf32, #tpu.memory_space<vmem>>, vector<8x128xf32>
      tpu.vector_store %arg9[%c184, %c0_68], %100 {strides = array<i32>} : memref<216x128xf32, #tpu.memory_space<vmem>>, vector<8x128xf32>,
      %c119_i32_69 = arith.constant 119 : i32
      %102 = tpu.dynamic_rotate %90 by %c119_i32_69 dim 1 : vector<8x128xf32>, i32 -> vector<8x128xf32>
      %c192 = arith.constant 192 : index
      %c0_70 = arith.constant 0 : index
      %103 = vector.load %arg9[%c192, %c0_70] : memref<216x128xf32, #tpu.memory_space<vmem>>, vector<8x128xf32>
      tpu.vector_store %arg9[%c192, %c0_70], %102 {strides = array<i32>} : memref<216x128xf32, #tpu.memory_space<vmem>>, vector<8x128xf32>,
      %c118_i32_71 = arith.constant 118 : i32
      %104 = tpu.dynamic_rotate %90 by %c118_i32_71 dim 1 : vector<8x128xf32>, i32 -> vector<8x128xf32>
      %c200 = arith.constant 200 : index
      %c0_72 = arith.constant 0 : index
      %105 = vector.load %arg9[%c200, %c0_72] : memref<216x128xf32, #tpu.memory_space<vmem>>, vector<8x128xf32>
      tpu.vector_store %arg9[%c200, %c0_72], %104 {strides = array<i32>} : memref<216x128xf32, #tpu.memory_space<vmem>>, vector<8x128xf32>,
      %c117_i32_73 = arith.constant 117 : i32
      %106 = tpu.dynamic_rotate %90 by %c117_i32_73 dim 1 : vector<8x128xf32>, i32 -> vector<8x128xf32>
      %c208 = arith.constant 208 : index
      %c0_74 = arith.constant 0 : index
      %107 = vector.load %arg9[%c208, %c0_74] : memref<216x128xf32, #tpu.memory_space<vmem>>, vector<8x128xf32>
      tpu.vector_store %arg9[%c208, %c0_74], %106 {strides = array<i32>} : memref<216x128xf32, #tpu.memory_space<vmem>>, vector<8x128xf32>,
      %c0_75 = arith.constant 0 : index
      %c0_76 = arith.constant 0 : index
      %108 = vector.load %arg6[%c0_75, %c0_76] : memref<4x216xf32, #tpu.memory_space<vmem>>, vector<4x216xf32>
      %c0_77 = arith.constant 0 : index
      %c0_78 = arith.constant 0 : index
      %109 = vector.load %arg9[%c0_77, %c0_78] : memref<216x128xf32, #tpu.memory_space<vmem>>, vector<216x128xf32>
      %cst_79 = arith.constant dense<0.000000e+00> : vector<4x128xf32>
      %110 = tpu.matmul %108, %109, %cst_79 {dimension_numbers = #tpu.dot_dimension_numbers<[1], [0], [0], [1], [0, 0, 1, 1], [], []>} : vector<4x216xf32>, vector<216x128xf32>, vector<4x128xf32> -> vector<4x128xf32>
      %111 = vector.broadcast %8 : vector<1x128xf32> to vector<4x128xf32>
      %112 = arith.mulf %110, %111 : vector<4x128xf32>
      %113 = arith.truncf %112 : vector<4x128xf32> to vector<4x128xbf16>
      %c0_80 = arith.constant 0 : index
      %c0_81 = arith.constant 0 : index
      %c0_82 = arith.constant 0 : index
      %c0_83 = arith.constant 0 : index
      %114 = vector.load %arg7[%c0_80, %c0_81, %c0_82, %c0_83] : memref<1x1x4x128xbf16, #tpu.memory_space<vmem>>, vector<1x1x4x128xbf16>
      %115 = vector.shape_cast %114 : vector<1x1x4x128xbf16> to vector<4x128xbf16>
      %116 = vector.shape_cast %113 : vector<4x128xbf16> to vector<1x1x4x128xbf16>
      tpu.vector_store %arg7[%c0_80, %c0_81, %c0_82, %c0_83], %116 {strides = array<i32>} : memref<1x1x4x128xbf16, #tpu.memory_space<vmem>>, vector<1x1x4x128xbf16>,
      %cst_84 = arith.constant dense<0.000000e+00> : vector<4xf32>
      %117 = vector.multi_reduction <add>, %112, %cst_84 [1] : vector<4x128xf32> to vector<4xf32>
      %118 = vector.shape_cast %117 : vector<4xf32> to vector<4x1xf32>
      %c0_85 = arith.constant 0 : index
      %c0_86 = arith.constant 0 : index
      %c0_87 = arith.constant 0 : index
      %c0_88 = arith.constant 0 : index
      %119 = vector.load %arg8[%c0_85, %c0_86, %c0_87, %c0_88] : memref<1x1x4x2xf32, #tpu.memory_space<vmem>>, vector<1x1x4x1xf32>
      %120 = vector.shape_cast %119 : vector<1x1x4x1xf32> to vector<4x1xf32>
      %121 = vector.shape_cast %118 : vector<4x1xf32> to vector<1x1x4x1xf32>
      tpu.vector_store %arg8[%c0_85, %c0_86, %c0_87, %c0_88], %121 {strides = array<i32>} : memref<1x1x4x2xf32, #tpu.memory_space<vmem>>, vector<1x1x4x1xf32>,
      %122 = arith.mulf %112, %112 : vector<4x128xf32>
      %cst_89 = arith.constant dense<0.000000e+00> : vector<4xf32>
      %123 = vector.multi_reduction <add>, %122, %cst_89 [1] : vector<4x128xf32> to vector<4xf32>
      %124 = vector.shape_cast %123 : vector<4xf32> to vector<4x1xf32>
      %c0_90 = arith.constant 0 : index
      %c0_91 = arith.constant 0 : index
      %c0_92 = arith.constant 0 : index
      %c1 = arith.constant 1 : index
      %125 = vector.load %arg8[%c0_90, %c0_91, %c0_92, %c1] : memref<1x1x4x2xf32, #tpu.memory_space<vmem>>, vector<1x1x4x1xf32>
      %126 = vector.shape_cast %125 : vector<1x1x4x1xf32> to vector<4x1xf32>
      %127 = vector.shape_cast %124 : vector<4x1xf32> to vector<1x1x4x1xf32>
      tpu.vector_store %arg8[%c0_90, %c0_91, %c0_92, %c1], %127 {strides = array<i32>} : memref<1x1x4x2xf32, #tpu.memory_space<vmem>>, vector<1x1x4x1xf32>,
    } else {
    }
    %true = arith.constant true
    %5 = arith.xori %2, %true : i1
    %6 = arith.extui %5 : i1 to i32
    %c0_i32_0 = arith.constant 0 : i32
    %7 = arith.cmpi ne, %6, %c0_i32_0 : i32
    scf.if %7 {
      %cst = arith.constant 0.000000e+00 : bf16
      %8 = vector.broadcast %cst : bf16 to vector<1x1x4x128xbf16>
      %c0 = arith.constant 0 : index
      %c0_1 = arith.constant 0 : index
      %c0_2 = arith.constant 0 : index
      %c0_3 = arith.constant 0 : index
      %9 = vector.load %arg7[%c0, %c0_1, %c0_2, %c0_3] : memref<1x1x4x128xbf16, #tpu.memory_space<vmem>>, vector<1x1x4x128xbf16>
      tpu.vector_store %arg7[%c0, %c0_1, %c0_2, %c0_3], %8 {strides = array<i32>} : memref<1x1x4x128xbf16, #tpu.memory_space<vmem>>, vector<1x1x4x128xbf16>,
      %cst_4 = arith.constant 0.000000e+00 : f32
      %10 = vector.broadcast %cst_4 : f32 to vector<1x1x4x2xf32>
      %c0_5 = arith.constant 0 : index
      %c0_6 = arith.constant 0 : index
      %c0_7 = arith.constant 0 : index
      %c0_8 = arith.constant 0 : index
      %11 = vector.load %arg8[%c0_5, %c0_6, %c0_7, %c0_8] : memref<1x1x4x2xf32, #tpu.memory_space<vmem>>, vector<1x1x4x2xf32>
      tpu.vector_store %arg8[%c0_5, %c0_6, %c0_7, %c0_8], %10 {strides = array<i32>} : memref<1x1x4x2xf32, #tpu.memory_space<vmem>>, vector<1x1x4x2xf32>,
    } else {
    }
    return
  }
  func.func @transform_0(%arg0: i32, %arg1: i32) -> (i32, i32, i32, i32) {
    %c0_i32 = arith.constant 0 : i32
    %c0_i32_0 = arith.constant 0 : i32
    %c0_i32_1 = arith.constant 0 : i32
    %c0_i32_2 = arith.constant 0 : i32
    return %arg0, %c0_i32, %c0_i32_0, %c0_i32_1 : i32, i32, i32, i32
  }
  func.func @transform_1(%arg0: i32, %arg1: i32) -> (i32, i32) {
    %c0_i32 = arith.constant 0 : i32
    %c0_i32_0 = arith.constant 0 : i32
    %c0_i32_1 = arith.constant 0 : i32
    return %c0_i32, %c0_i32_0 : i32, i32
  }
  func.func @transform_2(%arg0: i32, %arg1: i32) -> (i32, i32) {
    %c0_i32 = arith.constant 0 : i32
    %c0_i32_0 = arith.constant 0 : i32
    %c0_i32_1 = arith.constant 0 : i32
    return %c0_i32, %c0_i32_0 : i32, i32
  }
  func.func @transform_3(%arg0: i32, %arg1: i32) -> (i32, i32) {
    %c0_i32 = arith.constant 0 : i32
    %c0_i32_0 = arith.constant 0 : i32
    %c0_i32_1 = arith.constant 0 : i32
    return %c0_i32, %c0_i32_0 : i32, i32
  }
  func.func @transform_4(%arg0: i32, %arg1: i32) -> (i32, i32) {
    %c0_i32 = arith.constant 0 : i32
    %c0_i32_0 = arith.constant 0 : i32
    %c0_i32_1 = arith.constant 0 : i32
    return %c0_i32, %c0_i32_0 : i32, i32
  }
  func.func @transform_5(%arg0: i32, %arg1: i32) -> (i32, i32, i32, i32) {
    %c0_i32 = arith.constant 0 : i32
    %c0_i32_0 = arith.constant 0 : i32
    %c0_i32_1 = arith.constant 0 : i32
    return %arg0, %arg1, %c0_i32, %c0_i32_0 : i32, i32, i32, i32
  }
  func.func @transform_6(%arg0: i32, %arg1: i32) -> (i32, i32, i32, i32) {
    %c0_i32 = arith.constant 0 : i32
    %c0_i32_0 = arith.constant 0 : i32
    %c0_i32_1 = arith.constant 0 : i32
    return %arg0, %arg1, %c0_i32, %c0_i32_0 : i32, i32, i32, i32
  }
}

module attributes {stable_mosaic.version = 11 : i64} {
  func.func @_conv3_kernel(%arg0: i32, %arg1: i32, %arg2: memref<1x10x4x128xbf16, #tpu.memory_space<vmem>>, %arg3: memref<4x1xf32, #tpu.memory_space<vmem>>, %arg4: memref<4x1xf32, #tpu.memory_space<vmem>>, %arg5: memref<1x128xf32, #tpu.memory_space<vmem>>, %arg6: memref<4x108xf32, #tpu.memory_space<vmem>>, %arg7: memref<1x1x4x128xbf16, #tpu.memory_space<vmem>>, %arg8: memref<1x1x4x2xf32, #tpu.memory_space<vmem>>, %arg9: memref<108x128xf32, #tpu.memory_space<vmem>>) attributes {dimension_semantics = [#tpu.dimension_semantics<parallel>, #tpu.dimension_semantics<parallel>], iteration_bounds = array<i64: 1, 10>, scalar_prefetch = 0 : i64, scratch_operands = 1 : i64, tpu.core_type = #tpu.core_type<tc>, window_params = [{transform_indices = @transform_0, window_bounds = array<i64: 1, 10, 4, 128>}, {pipeline_mode = #tpu.pipeline_mode<synchronous>, transform_indices = @transform_1, window_bounds = array<i64: 4, 1>}, {pipeline_mode = #tpu.pipeline_mode<synchronous>, transform_indices = @transform_2, window_bounds = array<i64: 4, 1>}, {pipeline_mode = #tpu.pipeline_mode<synchronous>, transform_indices = @transform_3, window_bounds = array<i64: 1, 128>}, {pipeline_mode = #tpu.pipeline_mode<synchronous>, transform_indices = @transform_4, window_bounds = array<i64: 4, 108>}, {transform_indices = @transform_5, window_bounds = array<i64: 1, 1, 4, 128>}, {transform_indices = @transform_6, window_bounds = array<i64: 1, 1, 4, 2>}]} {
    %c1_i32 = arith.constant 1 : i32
    %0 = arith.cmpi sge, %arg1, %c1_i32 : i32
    %c8_i32 = arith.constant 8 : i32
    %1 = arith.cmpi sle, %arg1, %c8_i32 : i32
    %2 = arith.andi %0, %1 : i1
    %3 = arith.extui %2 : i1 to i32
    %c0_i32 = arith.constant 0 : i32
    %4 = arith.cmpi ne, %3, %c0_i32 : i32
    scf.if %4 {
      %c0 = arith.constant 0 : index
      %c0_1 = arith.constant 0 : index
      %8 = vector.load %arg5[%c0, %c0_1] : memref<1x128xf32, #tpu.memory_space<vmem>>, vector<1x128xf32>
      %c1_i32_2 = arith.constant 1 : i32
      %9 = arith.subi %arg1, %c1_i32_2 : i32
      %c0_i32_3 = arith.constant 0 : i32
      %10 = arith.addi %9, %c0_i32_3 : i32
      %c0_4 = arith.constant 0 : index
      %11 = arith.index_cast %10 : i32 to index
      %c0_5 = arith.constant 0 : index
      %c0_6 = arith.constant 0 : index
      %12 = vector.load %arg2[%c0_4, %11, %c0_5, %c0_6] : memref<1x10x4x128xbf16, #tpu.memory_space<vmem>>, vector<1x1x4x128xbf16>
      %13 = vector.shape_cast %12 : vector<1x1x4x128xbf16> to vector<4x128xbf16>
      %14 = arith.extf %13 : vector<4x128xbf16> to vector<4x128xf32>
      %c0_7 = arith.constant 0 : index
      %c0_8 = arith.constant 0 : index
      %15 = vector.load %arg3[%c0_7, %c0_8] : memref<4x1xf32, #tpu.memory_space<vmem>>, vector<4x1xf32>
      %16 = vector.broadcast %15 : vector<4x1xf32> to vector<4x128xf32>
      %17 = arith.mulf %14, %16 : vector<4x128xf32>
      %c0_9 = arith.constant 0 : index
      %c0_10 = arith.constant 0 : index
      %18 = vector.load %arg4[%c0_9, %c0_10] : memref<4x1xf32, #tpu.memory_space<vmem>>, vector<4x1xf32>
      %19 = vector.broadcast %18 : vector<4x1xf32> to vector<4x128xf32>
      %20 = arith.addf %17, %19 : vector<4x128xf32>
      %cst = arith.constant 0.000000e+00 : f32
      %21 = vector.broadcast %cst : f32 to vector<4x128xf32>
      %22 = arith.maximumf %20, %21 : vector<4x128xf32>
      %23 = vector.broadcast %8 : vector<1x128xf32> to vector<4x128xf32>
      %24 = arith.mulf %22, %23 : vector<4x128xf32>
      %c11_i32 = arith.constant 11 : i32
      %25 = tpu.dynamic_rotate %24 by %c11_i32 dim 1 : vector<4x128xf32>, i32 -> vector<4x128xf32>
      %c0_11 = arith.constant 0 : index
      %c0_12 = arith.constant 0 : index
      %26 = vector.load %arg9[%c0_11, %c0_12] : memref<108x128xf32, #tpu.memory_space<vmem>>, vector<4x128xf32>
      tpu.vector_store %arg9[%c0_11, %c0_12], %25 {strides = array<i32>} : memref<108x128xf32, #tpu.memory_space<vmem>>, vector<4x128xf32>,
      %c10_i32 = arith.constant 10 : i32
      %27 = tpu.dynamic_rotate %24 by %c10_i32 dim 1 : vector<4x128xf32>, i32 -> vector<4x128xf32>
      %c4 = arith.constant 4 : index
      %c0_13 = arith.constant 0 : index
      %28 = vector.load %arg9[%c4, %c0_13] : memref<108x128xf32, #tpu.memory_space<vmem>>, vector<4x128xf32>
      tpu.vector_store %arg9[%c4, %c0_13], %27 {strides = array<i32>} : memref<108x128xf32, #tpu.memory_space<vmem>>, vector<4x128xf32>,
      %c9_i32 = arith.constant 9 : i32
      %29 = tpu.dynamic_rotate %24 by %c9_i32 dim 1 : vector<4x128xf32>, i32 -> vector<4x128xf32>
      %c8 = arith.constant 8 : index
      %c0_14 = arith.constant 0 : index
      %30 = vector.load %arg9[%c8, %c0_14] : memref<108x128xf32, #tpu.memory_space<vmem>>, vector<4x128xf32>
      tpu.vector_store %arg9[%c8, %c0_14], %29 {strides = array<i32>} : memref<108x128xf32, #tpu.memory_space<vmem>>, vector<4x128xf32>,
      %c1_i32_15 = arith.constant 1 : i32
      %31 = tpu.dynamic_rotate %24 by %c1_i32_15 dim 1 : vector<4x128xf32>, i32 -> vector<4x128xf32>
      %c12 = arith.constant 12 : index
      %c0_16 = arith.constant 0 : index
      %32 = vector.load %arg9[%c12, %c0_16] : memref<108x128xf32, #tpu.memory_space<vmem>>, vector<4x128xf32>
      tpu.vector_store %arg9[%c12, %c0_16], %31 {strides = array<i32>} : memref<108x128xf32, #tpu.memory_space<vmem>>, vector<4x128xf32>,
      %c16 = arith.constant 16 : index
      %c0_17 = arith.constant 0 : index
      %33 = vector.load %arg9[%c16, %c0_17] : memref<108x128xf32, #tpu.memory_space<vmem>>, vector<4x128xf32>
      tpu.vector_store %arg9[%c16, %c0_17], %24 {strides = array<i32>} : memref<108x128xf32, #tpu.memory_space<vmem>>, vector<4x128xf32>,
      %c127_i32 = arith.constant 127 : i32
      %34 = tpu.dynamic_rotate %24 by %c127_i32 dim 1 : vector<4x128xf32>, i32 -> vector<4x128xf32>
      %c20 = arith.constant 20 : index
      %c0_18 = arith.constant 0 : index
      %35 = vector.load %arg9[%c20, %c0_18] : memref<108x128xf32, #tpu.memory_space<vmem>>, vector<4x128xf32>
      tpu.vector_store %arg9[%c20, %c0_18], %34 {strides = array<i32>} : memref<108x128xf32, #tpu.memory_space<vmem>>, vector<4x128xf32>,
      %c119_i32 = arith.constant 119 : i32
      %36 = tpu.dynamic_rotate %24 by %c119_i32 dim 1 : vector<4x128xf32>, i32 -> vector<4x128xf32>
      %c24 = arith.constant 24 : index
      %c0_19 = arith.constant 0 : index
      %37 = vector.load %arg9[%c24, %c0_19] : memref<108x128xf32, #tpu.memory_space<vmem>>, vector<4x128xf32>
      tpu.vector_store %arg9[%c24, %c0_19], %36 {strides = array<i32>} : memref<108x128xf32, #tpu.memory_space<vmem>>, vector<4x128xf32>,
      %c118_i32 = arith.constant 118 : i32
      %38 = tpu.dynamic_rotate %24 by %c118_i32 dim 1 : vector<4x128xf32>, i32 -> vector<4x128xf32>
      %c28 = arith.constant 28 : index
      %c0_20 = arith.constant 0 : index
      %39 = vector.load %arg9[%c28, %c0_20] : memref<108x128xf32, #tpu.memory_space<vmem>>, vector<4x128xf32>
      tpu.vector_store %arg9[%c28, %c0_20], %38 {strides = array<i32>} : memref<108x128xf32, #tpu.memory_space<vmem>>, vector<4x128xf32>,
      %c117_i32 = arith.constant 117 : i32
      %40 = tpu.dynamic_rotate %24 by %c117_i32 dim 1 : vector<4x128xf32>, i32 -> vector<4x128xf32>
      %c32 = arith.constant 32 : index
      %c0_21 = arith.constant 0 : index
      %41 = vector.load %arg9[%c32, %c0_21] : memref<108x128xf32, #tpu.memory_space<vmem>>, vector<4x128xf32>
      tpu.vector_store %arg9[%c32, %c0_21], %40 {strides = array<i32>} : memref<108x128xf32, #tpu.memory_space<vmem>>, vector<4x128xf32>,
      %c1_i32_22 = arith.constant 1 : i32
      %42 = arith.subi %arg1, %c1_i32_22 : i32
      %c1_i32_23 = arith.constant 1 : i32
      %43 = arith.addi %42, %c1_i32_23 : i32
      %c0_24 = arith.constant 0 : index
      %44 = arith.index_cast %43 : i32 to index
      %c0_25 = arith.constant 0 : index
      %c0_26 = arith.constant 0 : index
      %45 = vector.load %arg2[%c0_24, %44, %c0_25, %c0_26] : memref<1x10x4x128xbf16, #tpu.memory_space<vmem>>, vector<1x1x4x128xbf16>
      %46 = vector.shape_cast %45 : vector<1x1x4x128xbf16> to vector<4x128xbf16>
      %47 = arith.extf %46 : vector<4x128xbf16> to vector<4x128xf32>
      %c0_27 = arith.constant 0 : index
      %c0_28 = arith.constant 0 : index
      %48 = vector.load %arg3[%c0_27, %c0_28] : memref<4x1xf32, #tpu.memory_space<vmem>>, vector<4x1xf32>
      %49 = vector.broadcast %48 : vector<4x1xf32> to vector<4x128xf32>
      %50 = arith.mulf %47, %49 : vector<4x128xf32>
      %c0_29 = arith.constant 0 : index
      %c0_30 = arith.constant 0 : index
      %51 = vector.load %arg4[%c0_29, %c0_30] : memref<4x1xf32, #tpu.memory_space<vmem>>, vector<4x1xf32>
      %52 = vector.broadcast %51 : vector<4x1xf32> to vector<4x128xf32>
      %53 = arith.addf %50, %52 : vector<4x128xf32>
      %cst_31 = arith.constant 0.000000e+00 : f32
      %54 = vector.broadcast %cst_31 : f32 to vector<4x128xf32>
      %55 = arith.maximumf %53, %54 : vector<4x128xf32>
      %56 = vector.broadcast %8 : vector<1x128xf32> to vector<4x128xf32>
      %57 = arith.mulf %55, %56 : vector<4x128xf32>
      %c11_i32_32 = arith.constant 11 : i32
      %58 = tpu.dynamic_rotate %57 by %c11_i32_32 dim 1 : vector<4x128xf32>, i32 -> vector<4x128xf32>
      %c36 = arith.constant 36 : index
      %c0_33 = arith.constant 0 : index
      %59 = vector.load %arg9[%c36, %c0_33] : memref<108x128xf32, #tpu.memory_space<vmem>>, vector<4x128xf32>
      tpu.vector_store %arg9[%c36, %c0_33], %58 {strides = array<i32>} : memref<108x128xf32, #tpu.memory_space<vmem>>, vector<4x128xf32>,
      %c10_i32_34 = arith.constant 10 : i32
      %60 = tpu.dynamic_rotate %57 by %c10_i32_34 dim 1 : vector<4x128xf32>, i32 -> vector<4x128xf32>
      %c40 = arith.constant 40 : index
      %c0_35 = arith.constant 0 : index
      %61 = vector.load %arg9[%c40, %c0_35] : memref<108x128xf32, #tpu.memory_space<vmem>>, vector<4x128xf32>
      tpu.vector_store %arg9[%c40, %c0_35], %60 {strides = array<i32>} : memref<108x128xf32, #tpu.memory_space<vmem>>, vector<4x128xf32>,
      %c9_i32_36 = arith.constant 9 : i32
      %62 = tpu.dynamic_rotate %57 by %c9_i32_36 dim 1 : vector<4x128xf32>, i32 -> vector<4x128xf32>
      %c44 = arith.constant 44 : index
      %c0_37 = arith.constant 0 : index
      %63 = vector.load %arg9[%c44, %c0_37] : memref<108x128xf32, #tpu.memory_space<vmem>>, vector<4x128xf32>
      tpu.vector_store %arg9[%c44, %c0_37], %62 {strides = array<i32>} : memref<108x128xf32, #tpu.memory_space<vmem>>, vector<4x128xf32>,
      %c1_i32_38 = arith.constant 1 : i32
      %64 = tpu.dynamic_rotate %57 by %c1_i32_38 dim 1 : vector<4x128xf32>, i32 -> vector<4x128xf32>
      %c48 = arith.constant 48 : index
      %c0_39 = arith.constant 0 : index
      %65 = vector.load %arg9[%c48, %c0_39] : memref<108x128xf32, #tpu.memory_space<vmem>>, vector<4x128xf32>
      tpu.vector_store %arg9[%c48, %c0_39], %64 {strides = array<i32>} : memref<108x128xf32, #tpu.memory_space<vmem>>, vector<4x128xf32>,
      %c52 = arith.constant 52 : index
      %c0_40 = arith.constant 0 : index
      %66 = vector.load %arg9[%c52, %c0_40] : memref<108x128xf32, #tpu.memory_space<vmem>>, vector<4x128xf32>
      tpu.vector_store %arg9[%c52, %c0_40], %57 {strides = array<i32>} : memref<108x128xf32, #tpu.memory_space<vmem>>, vector<4x128xf32>,
      %c127_i32_41 = arith.constant 127 : i32
      %67 = tpu.dynamic_rotate %57 by %c127_i32_41 dim 1 : vector<4x128xf32>, i32 -> vector<4x128xf32>
      %c56 = arith.constant 56 : index
      %c0_42 = arith.constant 0 : index
      %68 = vector.load %arg9[%c56, %c0_42] : memref<108x128xf32, #tpu.memory_space<vmem>>, vector<4x128xf32>
      tpu.vector_store %arg9[%c56, %c0_42], %67 {strides = array<i32>} : memref<108x128xf32, #tpu.memory_space<vmem>>, vector<4x128xf32>,
      %c119_i32_43 = arith.constant 119 : i32
      %69 = tpu.dynamic_rotate %57 by %c119_i32_43 dim 1 : vector<4x128xf32>, i32 -> vector<4x128xf32>
      %c60 = arith.constant 60 : index
      %c0_44 = arith.constant 0 : index
      %70 = vector.load %arg9[%c60, %c0_44] : memref<108x128xf32, #tpu.memory_space<vmem>>, vector<4x128xf32>
      tpu.vector_store %arg9[%c60, %c0_44], %69 {strides = array<i32>} : memref<108x128xf32, #tpu.memory_space<vmem>>, vector<4x128xf32>,
      %c118_i32_45 = arith.constant 118 : i32
      %71 = tpu.dynamic_rotate %57 by %c118_i32_45 dim 1 : vector<4x128xf32>, i32 -> vector<4x128xf32>
      %c64 = arith.constant 64 : index
      %c0_46 = arith.constant 0 : index
      %72 = vector.load %arg9[%c64, %c0_46] : memref<108x128xf32, #tpu.memory_space<vmem>>, vector<4x128xf32>
      tpu.vector_store %arg9[%c64, %c0_46], %71 {strides = array<i32>} : memref<108x128xf32, #tpu.memory_space<vmem>>, vector<4x128xf32>,
      %c117_i32_47 = arith.constant 117 : i32
      %73 = tpu.dynamic_rotate %57 by %c117_i32_47 dim 1 : vector<4x128xf32>, i32 -> vector<4x128xf32>
      %c68 = arith.constant 68 : index
      %c0_48 = arith.constant 0 : index
      %74 = vector.load %arg9[%c68, %c0_48] : memref<108x128xf32, #tpu.memory_space<vmem>>, vector<4x128xf32>
      tpu.vector_store %arg9[%c68, %c0_48], %73 {strides = array<i32>} : memref<108x128xf32, #tpu.memory_space<vmem>>, vector<4x128xf32>,
      %c1_i32_49 = arith.constant 1 : i32
      %75 = arith.subi %arg1, %c1_i32_49 : i32
      %c2_i32 = arith.constant 2 : i32
      %76 = arith.addi %75, %c2_i32 : i32
      %c0_50 = arith.constant 0 : index
      %77 = arith.index_cast %76 : i32 to index
      %c0_51 = arith.constant 0 : index
      %c0_52 = arith.constant 0 : index
      %78 = vector.load %arg2[%c0_50, %77, %c0_51, %c0_52] : memref<1x10x4x128xbf16, #tpu.memory_space<vmem>>, vector<1x1x4x128xbf16>
      %79 = vector.shape_cast %78 : vector<1x1x4x128xbf16> to vector<4x128xbf16>
      %80 = arith.extf %79 : vector<4x128xbf16> to vector<4x128xf32>
      %c0_53 = arith.constant 0 : index
      %c0_54 = arith.constant 0 : index
      %81 = vector.load %arg3[%c0_53, %c0_54] : memref<4x1xf32, #tpu.memory_space<vmem>>, vector<4x1xf32>
      %82 = vector.broadcast %81 : vector<4x1xf32> to vector<4x128xf32>
      %83 = arith.mulf %80, %82 : vector<4x128xf32>
      %c0_55 = arith.constant 0 : index
      %c0_56 = arith.constant 0 : index
      %84 = vector.load %arg4[%c0_55, %c0_56] : memref<4x1xf32, #tpu.memory_space<vmem>>, vector<4x1xf32>
      %85 = vector.broadcast %84 : vector<4x1xf32> to vector<4x128xf32>
      %86 = arith.addf %83, %85 : vector<4x128xf32>
      %cst_57 = arith.constant 0.000000e+00 : f32
      %87 = vector.broadcast %cst_57 : f32 to vector<4x128xf32>
      %88 = arith.maximumf %86, %87 : vector<4x128xf32>
      %89 = vector.broadcast %8 : vector<1x128xf32> to vector<4x128xf32>
      %90 = arith.mulf %88, %89 : vector<4x128xf32>
      %c11_i32_58 = arith.constant 11 : i32
      %91 = tpu.dynamic_rotate %90 by %c11_i32_58 dim 1 : vector<4x128xf32>, i32 -> vector<4x128xf32>
      %c72 = arith.constant 72 : index
      %c0_59 = arith.constant 0 : index
      %92 = vector.load %arg9[%c72, %c0_59] : memref<108x128xf32, #tpu.memory_space<vmem>>, vector<4x128xf32>
      tpu.vector_store %arg9[%c72, %c0_59], %91 {strides = array<i32>} : memref<108x128xf32, #tpu.memory_space<vmem>>, vector<4x128xf32>,
      %c10_i32_60 = arith.constant 10 : i32
      %93 = tpu.dynamic_rotate %90 by %c10_i32_60 dim 1 : vector<4x128xf32>, i32 -> vector<4x128xf32>
      %c76 = arith.constant 76 : index
      %c0_61 = arith.constant 0 : index
      %94 = vector.load %arg9[%c76, %c0_61] : memref<108x128xf32, #tpu.memory_space<vmem>>, vector<4x128xf32>
      tpu.vector_store %arg9[%c76, %c0_61], %93 {strides = array<i32>} : memref<108x128xf32, #tpu.memory_space<vmem>>, vector<4x128xf32>,
      %c9_i32_62 = arith.constant 9 : i32
      %95 = tpu.dynamic_rotate %90 by %c9_i32_62 dim 1 : vector<4x128xf32>, i32 -> vector<4x128xf32>
      %c80 = arith.constant 80 : index
      %c0_63 = arith.constant 0 : index
      %96 = vector.load %arg9[%c80, %c0_63] : memref<108x128xf32, #tpu.memory_space<vmem>>, vector<4x128xf32>
      tpu.vector_store %arg9[%c80, %c0_63], %95 {strides = array<i32>} : memref<108x128xf32, #tpu.memory_space<vmem>>, vector<4x128xf32>,
      %c1_i32_64 = arith.constant 1 : i32
      %97 = tpu.dynamic_rotate %90 by %c1_i32_64 dim 1 : vector<4x128xf32>, i32 -> vector<4x128xf32>
      %c84 = arith.constant 84 : index
      %c0_65 = arith.constant 0 : index
      %98 = vector.load %arg9[%c84, %c0_65] : memref<108x128xf32, #tpu.memory_space<vmem>>, vector<4x128xf32>
      tpu.vector_store %arg9[%c84, %c0_65], %97 {strides = array<i32>} : memref<108x128xf32, #tpu.memory_space<vmem>>, vector<4x128xf32>,
      %c88 = arith.constant 88 : index
      %c0_66 = arith.constant 0 : index
      %99 = vector.load %arg9[%c88, %c0_66] : memref<108x128xf32, #tpu.memory_space<vmem>>, vector<4x128xf32>
      tpu.vector_store %arg9[%c88, %c0_66], %90 {strides = array<i32>} : memref<108x128xf32, #tpu.memory_space<vmem>>, vector<4x128xf32>,
      %c127_i32_67 = arith.constant 127 : i32
      %100 = tpu.dynamic_rotate %90 by %c127_i32_67 dim 1 : vector<4x128xf32>, i32 -> vector<4x128xf32>
      %c92 = arith.constant 92 : index
      %c0_68 = arith.constant 0 : index
      %101 = vector.load %arg9[%c92, %c0_68] : memref<108x128xf32, #tpu.memory_space<vmem>>, vector<4x128xf32>
      tpu.vector_store %arg9[%c92, %c0_68], %100 {strides = array<i32>} : memref<108x128xf32, #tpu.memory_space<vmem>>, vector<4x128xf32>,
      %c119_i32_69 = arith.constant 119 : i32
      %102 = tpu.dynamic_rotate %90 by %c119_i32_69 dim 1 : vector<4x128xf32>, i32 -> vector<4x128xf32>
      %c96 = arith.constant 96 : index
      %c0_70 = arith.constant 0 : index
      %103 = vector.load %arg9[%c96, %c0_70] : memref<108x128xf32, #tpu.memory_space<vmem>>, vector<4x128xf32>
      tpu.vector_store %arg9[%c96, %c0_70], %102 {strides = array<i32>} : memref<108x128xf32, #tpu.memory_space<vmem>>, vector<4x128xf32>,
      %c118_i32_71 = arith.constant 118 : i32
      %104 = tpu.dynamic_rotate %90 by %c118_i32_71 dim 1 : vector<4x128xf32>, i32 -> vector<4x128xf32>
      %c100 = arith.constant 100 : index
      %c0_72 = arith.constant 0 : index
      %105 = vector.load %arg9[%c100, %c0_72] : memref<108x128xf32, #tpu.memory_space<vmem>>, vector<4x128xf32>
      tpu.vector_store %arg9[%c100, %c0_72], %104 {strides = array<i32>} : memref<108x128xf32, #tpu.memory_space<vmem>>, vector<4x128xf32>,
      %c117_i32_73 = arith.constant 117 : i32
      %106 = tpu.dynamic_rotate %90 by %c117_i32_73 dim 1 : vector<4x128xf32>, i32 -> vector<4x128xf32>
      %c104 = arith.constant 104 : index
      %c0_74 = arith.constant 0 : index
      %107 = vector.load %arg9[%c104, %c0_74] : memref<108x128xf32, #tpu.memory_space<vmem>>, vector<4x128xf32>
      tpu.vector_store %arg9[%c104, %c0_74], %106 {strides = array<i32>} : memref<108x128xf32, #tpu.memory_space<vmem>>, vector<4x128xf32>,
      %c0_75 = arith.constant 0 : index
      %c0_76 = arith.constant 0 : index
      %108 = vector.load %arg6[%c0_75, %c0_76] : memref<4x108xf32, #tpu.memory_space<vmem>>, vector<4x108xf32>
      %c0_77 = arith.constant 0 : index
      %c0_78 = arith.constant 0 : index
      %109 = vector.load %arg9[%c0_77, %c0_78] : memref<108x128xf32, #tpu.memory_space<vmem>>, vector<108x128xf32>
      %cst_79 = arith.constant dense<0.000000e+00> : vector<4x128xf32>
      %110 = tpu.matmul %108, %109, %cst_79 {dimension_numbers = #tpu.dot_dimension_numbers<[1], [0], [0], [1], [0, 0, 1, 1], [], []>} : vector<4x108xf32>, vector<108x128xf32>, vector<4x128xf32> -> vector<4x128xf32>
      %111 = vector.broadcast %8 : vector<1x128xf32> to vector<4x128xf32>
      %112 = arith.mulf %110, %111 : vector<4x128xf32>
      %113 = arith.truncf %112 : vector<4x128xf32> to vector<4x128xbf16>
      %c0_80 = arith.constant 0 : index
      %c0_81 = arith.constant 0 : index
      %c0_82 = arith.constant 0 : index
      %c0_83 = arith.constant 0 : index
      %114 = vector.load %arg7[%c0_80, %c0_81, %c0_82, %c0_83] : memref<1x1x4x128xbf16, #tpu.memory_space<vmem>>, vector<1x1x4x128xbf16>
      %115 = vector.shape_cast %114 : vector<1x1x4x128xbf16> to vector<4x128xbf16>
      %116 = vector.shape_cast %113 : vector<4x128xbf16> to vector<1x1x4x128xbf16>
      tpu.vector_store %arg7[%c0_80, %c0_81, %c0_82, %c0_83], %116 {strides = array<i32>} : memref<1x1x4x128xbf16, #tpu.memory_space<vmem>>, vector<1x1x4x128xbf16>,
      %cst_84 = arith.constant dense<0.000000e+00> : vector<4xf32>
      %117 = vector.multi_reduction <add>, %112, %cst_84 [1] : vector<4x128xf32> to vector<4xf32>
      %118 = vector.shape_cast %117 : vector<4xf32> to vector<4x1xf32>
      %c0_85 = arith.constant 0 : index
      %c0_86 = arith.constant 0 : index
      %c0_87 = arith.constant 0 : index
      %c0_88 = arith.constant 0 : index
      %119 = vector.load %arg8[%c0_85, %c0_86, %c0_87, %c0_88] : memref<1x1x4x2xf32, #tpu.memory_space<vmem>>, vector<1x1x4x1xf32>
      %120 = vector.shape_cast %119 : vector<1x1x4x1xf32> to vector<4x1xf32>
      %121 = vector.shape_cast %118 : vector<4x1xf32> to vector<1x1x4x1xf32>
      tpu.vector_store %arg8[%c0_85, %c0_86, %c0_87, %c0_88], %121 {strides = array<i32>} : memref<1x1x4x2xf32, #tpu.memory_space<vmem>>, vector<1x1x4x1xf32>,
      %122 = arith.mulf %112, %112 : vector<4x128xf32>
      %cst_89 = arith.constant dense<0.000000e+00> : vector<4xf32>
      %123 = vector.multi_reduction <add>, %122, %cst_89 [1] : vector<4x128xf32> to vector<4xf32>
      %124 = vector.shape_cast %123 : vector<4xf32> to vector<4x1xf32>
      %c0_90 = arith.constant 0 : index
      %c0_91 = arith.constant 0 : index
      %c0_92 = arith.constant 0 : index
      %c1 = arith.constant 1 : index
      %125 = vector.load %arg8[%c0_90, %c0_91, %c0_92, %c1] : memref<1x1x4x2xf32, #tpu.memory_space<vmem>>, vector<1x1x4x1xf32>
      %126 = vector.shape_cast %125 : vector<1x1x4x1xf32> to vector<4x1xf32>
      %127 = vector.shape_cast %124 : vector<4x1xf32> to vector<1x1x4x1xf32>
      tpu.vector_store %arg8[%c0_90, %c0_91, %c0_92, %c1], %127 {strides = array<i32>} : memref<1x1x4x2xf32, #tpu.memory_space<vmem>>, vector<1x1x4x1xf32>,
    } else {
    }
    %true = arith.constant true
    %5 = arith.xori %2, %true : i1
    %6 = arith.extui %5 : i1 to i32
    %c0_i32_0 = arith.constant 0 : i32
    %7 = arith.cmpi ne, %6, %c0_i32_0 : i32
    scf.if %7 {
      %cst = arith.constant 0.000000e+00 : bf16
      %8 = vector.broadcast %cst : bf16 to vector<1x1x4x128xbf16>
      %c0 = arith.constant 0 : index
      %c0_1 = arith.constant 0 : index
      %c0_2 = arith.constant 0 : index
      %c0_3 = arith.constant 0 : index
      %9 = vector.load %arg7[%c0, %c0_1, %c0_2, %c0_3] : memref<1x1x4x128xbf16, #tpu.memory_space<vmem>>, vector<1x1x4x128xbf16>
      tpu.vector_store %arg7[%c0, %c0_1, %c0_2, %c0_3], %8 {strides = array<i32>} : memref<1x1x4x128xbf16, #tpu.memory_space<vmem>>, vector<1x1x4x128xbf16>,
      %cst_4 = arith.constant 0.000000e+00 : f32
      %10 = vector.broadcast %cst_4 : f32 to vector<1x1x4x2xf32>
      %c0_5 = arith.constant 0 : index
      %c0_6 = arith.constant 0 : index
      %c0_7 = arith.constant 0 : index
      %c0_8 = arith.constant 0 : index
      %11 = vector.load %arg8[%c0_5, %c0_6, %c0_7, %c0_8] : memref<1x1x4x2xf32, #tpu.memory_space<vmem>>, vector<1x1x4x2xf32>
      tpu.vector_store %arg8[%c0_5, %c0_6, %c0_7, %c0_8], %10 {strides = array<i32>} : memref<1x1x4x2xf32, #tpu.memory_space<vmem>>, vector<1x1x4x2xf32>,
    } else {
    }
    return
  }
  func.func @transform_0(%arg0: i32, %arg1: i32) -> (i32, i32, i32, i32) {
    %c0_i32 = arith.constant 0 : i32
    %c0_i32_0 = arith.constant 0 : i32
    %c0_i32_1 = arith.constant 0 : i32
    %c0_i32_2 = arith.constant 0 : i32
    return %arg0, %c0_i32, %c0_i32_0, %c0_i32_1 : i32, i32, i32, i32
  }
  func.func @transform_1(%arg0: i32, %arg1: i32) -> (i32, i32) {
    %c0_i32 = arith.constant 0 : i32
    %c0_i32_0 = arith.constant 0 : i32
    %c0_i32_1 = arith.constant 0 : i32
    return %c0_i32, %c0_i32_0 : i32, i32
  }
  func.func @transform_2(%arg0: i32, %arg1: i32) -> (i32, i32) {
    %c0_i32 = arith.constant 0 : i32
    %c0_i32_0 = arith.constant 0 : i32
    %c0_i32_1 = arith.constant 0 : i32
    return %c0_i32, %c0_i32_0 : i32, i32
  }
  func.func @transform_3(%arg0: i32, %arg1: i32) -> (i32, i32) {
    %c0_i32 = arith.constant 0 : i32
    %c0_i32_0 = arith.constant 0 : i32
    %c0_i32_1 = arith.constant 0 : i32
    return %c0_i32, %c0_i32_0 : i32, i32
  }
  func.func @transform_4(%arg0: i32, %arg1: i32) -> (i32, i32) {
    %c0_i32 = arith.constant 0 : i32
    %c0_i32_0 = arith.constant 0 : i32
    %c0_i32_1 = arith.constant 0 : i32
    return %c0_i32, %c0_i32_0 : i32, i32
  }
  func.func @transform_5(%arg0: i32, %arg1: i32) -> (i32, i32, i32, i32) {
    %c0_i32 = arith.constant 0 : i32
    %c0_i32_0 = arith.constant 0 : i32
    %c0_i32_1 = arith.constant 0 : i32
    return %arg0, %arg1, %c0_i32, %c0_i32_0 : i32, i32, i32, i32
  }
  func.func @transform_6(%arg0: i32, %arg1: i32) -> (i32, i32, i32, i32) {
    %c0_i32 = arith.constant 0 : i32
    %c0_i32_0 = arith.constant 0 : i32
    %c0_i32_1 = arith.constant 0 : i32
    return %arg0, %arg1, %c0_i32, %c0_i32_0 : i32, i32, i32, i32
  }
}

module attributes {stable_mosaic.version = 11 : i64} {
  func.func @_conv1_kernel(%arg0: i32, %arg1: i32, %arg2: memref<1x1x4x128xbf16, #tpu.memory_space<vmem>>, %arg3: memref<4x1xf32, #tpu.memory_space<vmem>>, %arg4: memref<4x1xf32, #tpu.memory_space<vmem>>, %arg5: memref<1x128xf32, #tpu.memory_space<vmem>>, %arg6: memref<2x4xf32, #tpu.memory_space<vmem>>, %arg7: memref<2x1xf32, #tpu.memory_space<vmem>>, %arg8: memref<1x1x2x128xf32, #tpu.memory_space<vmem>>) attributes {dimension_semantics = [#tpu.dimension_semantics<parallel>, #tpu.dimension_semantics<parallel>], iteration_bounds = array<i64: 1, 8>, scalar_prefetch = 0 : i64, scratch_operands = 0 : i64, tpu.core_type = #tpu.core_type<tc>, window_params = [{transform_indices = @transform_0, window_bounds = array<i64: 1, 1, 4, 128>}, {pipeline_mode = #tpu.pipeline_mode<synchronous>, transform_indices = @transform_1, window_bounds = array<i64: 4, 1>}, {pipeline_mode = #tpu.pipeline_mode<synchronous>, transform_indices = @transform_2, window_bounds = array<i64: 4, 1>}, {pipeline_mode = #tpu.pipeline_mode<synchronous>, transform_indices = @transform_3, window_bounds = array<i64: 1, 128>}, {pipeline_mode = #tpu.pipeline_mode<synchronous>, transform_indices = @transform_4, window_bounds = array<i64: 2, 4>}, {pipeline_mode = #tpu.pipeline_mode<synchronous>, transform_indices = @transform_5, window_bounds = array<i64: 2, 1>}, {transform_indices = @transform_6, window_bounds = array<i64: 1, 1, 2, 128>}]} {
    %c0 = arith.constant 0 : index
    %c0_0 = arith.constant 0 : index
    %c0_1 = arith.constant 0 : index
    %c0_2 = arith.constant 0 : index
    %0 = vector.load %arg2[%c0, %c0_0, %c0_1, %c0_2] : memref<1x1x4x128xbf16, #tpu.memory_space<vmem>>, vector<1x1x4x128xbf16>
    %1 = vector.shape_cast %0 : vector<1x1x4x128xbf16> to vector<4x128xbf16>
    %2 = arith.extf %1 : vector<4x128xbf16> to vector<4x128xf32>
    %c0_3 = arith.constant 0 : index
    %c0_4 = arith.constant 0 : index
    %3 = vector.load %arg3[%c0_3, %c0_4] : memref<4x1xf32, #tpu.memory_space<vmem>>, vector<4x1xf32>
    %4 = vector.broadcast %3 : vector<4x1xf32> to vector<4x128xf32>
    %5 = arith.mulf %2, %4 : vector<4x128xf32>
    %c0_5 = arith.constant 0 : index
    %c0_6 = arith.constant 0 : index
    %6 = vector.load %arg4[%c0_5, %c0_6] : memref<4x1xf32, #tpu.memory_space<vmem>>, vector<4x1xf32>
    %7 = vector.broadcast %6 : vector<4x1xf32> to vector<4x128xf32>
    %8 = arith.addf %5, %7 : vector<4x128xf32>
    %cst = arith.constant 0.000000e+00 : f32
    %9 = vector.broadcast %cst : f32 to vector<4x128xf32>
    %10 = arith.maximumf %8, %9 : vector<4x128xf32>
    %c0_7 = arith.constant 0 : index
    %c0_8 = arith.constant 0 : index
    %11 = vector.load %arg5[%c0_7, %c0_8] : memref<1x128xf32, #tpu.memory_space<vmem>>, vector<1x128xf32>
    %12 = vector.broadcast %11 : vector<1x128xf32> to vector<4x128xf32>
    %13 = arith.mulf %10, %12 : vector<4x128xf32>
    %c0_9 = arith.constant 0 : index
    %c0_10 = arith.constant 0 : index
    %14 = vector.load %arg6[%c0_9, %c0_10] : memref<2x4xf32, #tpu.memory_space<vmem>>, vector<2x4xf32>
    %cst_11 = arith.constant dense<0.000000e+00> : vector<2x128xf32>
    %15 = tpu.matmul %14, %13, %cst_11 {dimension_numbers = #tpu.dot_dimension_numbers<[1], [0], [0], [1], [0, 0, 1, 1], [], []>} : vector<2x4xf32>, vector<4x128xf32>, vector<2x128xf32> -> vector<2x128xf32>
    %c0_12 = arith.constant 0 : index
    %c0_13 = arith.constant 0 : index
    %16 = vector.load %arg7[%c0_12, %c0_13] : memref<2x1xf32, #tpu.memory_space<vmem>>, vector<2x1xf32>
    %17 = vector.broadcast %16 : vector<2x1xf32> to vector<2x128xf32>
    %18 = arith.addf %15, %17 : vector<2x128xf32>
    %c0_14 = arith.constant 0 : index
    %c0_15 = arith.constant 0 : index
    %c0_16 = arith.constant 0 : index
    %c0_17 = arith.constant 0 : index
    %19 = vector.load %arg8[%c0_14, %c0_15, %c0_16, %c0_17] : memref<1x1x2x128xf32, #tpu.memory_space<vmem>>, vector<1x1x2x128xf32>
    %20 = vector.shape_cast %19 : vector<1x1x2x128xf32> to vector<2x128xf32>
    %21 = vector.shape_cast %18 : vector<2x128xf32> to vector<1x1x2x128xf32>
    tpu.vector_store %arg8[%c0_14, %c0_15, %c0_16, %c0_17], %21 {strides = array<i32>} : memref<1x1x2x128xf32, #tpu.memory_space<vmem>>, vector<1x1x2x128xf32>,
    return
  }
  func.func @transform_0(%arg0: i32, %arg1: i32) -> (i32, i32, i32, i32) {
    %c1_i32 = arith.constant 1 : i32
    %0 = arith.addi %arg1, %c1_i32 : i32
    %c0_i32 = arith.constant 0 : i32
    %c0_i32_0 = arith.constant 0 : i32
    %c0_i32_1 = arith.constant 0 : i32
    return %arg0, %0, %c0_i32, %c0_i32_0 : i32, i32, i32, i32
  }
  func.func @transform_1(%arg0: i32, %arg1: i32) -> (i32, i32) {
    %c0_i32 = arith.constant 0 : i32
    %c0_i32_0 = arith.constant 0 : i32
    %c0_i32_1 = arith.constant 0 : i32
    return %c0_i32, %c0_i32_0 : i32, i32
  }
  func.func @transform_2(%arg0: i32, %arg1: i32) -> (i32, i32) {
    %c0_i32 = arith.constant 0 : i32
    %c0_i32_0 = arith.constant 0 : i32
    %c0_i32_1 = arith.constant 0 : i32
    return %c0_i32, %c0_i32_0 : i32, i32
  }
  func.func @transform_3(%arg0: i32, %arg1: i32) -> (i32, i32) {
    %c0_i32 = arith.constant 0 : i32
    %c0_i32_0 = arith.constant 0 : i32
    %c0_i32_1 = arith.constant 0 : i32
    return %c0_i32, %c0_i32_0 : i32, i32
  }
  func.func @transform_4(%arg0: i32, %arg1: i32) -> (i32, i32) {
    %c0_i32 = arith.constant 0 : i32
    %c0_i32_0 = arith.constant 0 : i32
    %c0_i32_1 = arith.constant 0 : i32
    return %c0_i32, %c0_i32_0 : i32, i32
  }
  func.func @transform_5(%arg0: i32, %arg1: i32) -> (i32, i32) {
    %c0_i32 = arith.constant 0 : i32
    %c0_i32_0 = arith.constant 0 : i32
    %c0_i32_1 = arith.constant 0 : i32
    return %c0_i32, %c0_i32_0 : i32, i32
  }
  func.func @transform_6(%arg0: i32, %arg1: i32) -> (i32, i32, i32, i32) {
    %c0_i32 = arith.constant 0 : i32
    %c0_i32_0 = arith.constant 0 : i32
    %c0_i32_1 = arith.constant 0 : i32
    return %arg0, %arg1, %c0_i32, %c0_i32_0 : i32, i32, i32, i32
  }
}

</mosaic_0001>

<bundles_post_ra>
// kernel: decoder_forward.4
= control target key start
LH: loop header
LB: loop body
LE: loop exit
PB: predicated region body
PF: predicated region fallthrough
CT: control target
= control target key end

     0   :  { %s814_s21 = smov 0   ;;  %s816_s22 = smov 0   ;;  %s914_s0 = inlined_call_operand.vmem [shape: bf16[1,10,8,128], index: 0, kind: input, shape index: {}]   ;;  %s915_s1 = inlined_call_operand.vmem [shape: f32[8,1], index: 1, kind: input, shape index: {}]   ;;  %s916_s2 = inlined_call_operand.vmem [shape: f32[8,1], index: 2, kind: input, shape index: {}]   ;;  %s917_s3 = inlined_call_operand.vmem [shape: f32[1,128], index: 3, kind: input, shape index: {}]   ;;  %s918_s4 = inlined_call_operand.vmem [shape: f32[8,216], index: 4, kind: input, shape index: {}]   ;;  %s919_s5 = inlined_call_operand.vmem [shape: bf16[1,10,8,128], index: 5, kind: output, shape index: {0}]   ;;  %s920_s6 = inlined_call_operand.vmem [shape: f32[1,10,8,2], index: 6, kind: output, shape index: {1}]  }
   0x1   :  { %s818_s1 = smov 0  }
   0x2 LB: > { %s26_s2 = sadd.s32 1, %s761_s22  ;;  %p656_p0 = scmp.ge.s32.totalorder %s765_s1, 1  ;;  %s765_s1 = sphi %s818_s1, %s17_s1   ;;  %s761_s22 = sphi %s816_s22, %s923_s22   ;;  %s757_s21 = sphi %s814_s21, %s922_s21  }
   0x3   : > { %p27_p1 = scmp.ge.s32.totalorder %s26_s2, 10  ;;  %p231_p2 = scmp.lt.s32.totalorder %s765_s1, 11 }
   0x5   : > { %s925_s2 = smov (%p27_p1, %s26_s2), 0  ;;  %p232_p3 = pnand %p656_p0, %p231_p2 }
   0x6   : > { %p279_p4 = scmp.lt.s32.totalorder (!%p232_p3), %s757_s21, 9  ;;  %p294_p5 = scmp.ge.s32.totalorder (!%p232_p3), %s757_s21, 1 }
   0x7   : > { %235 = sbr.rel (%p232_p3) target bundleno = 563 (0x233), region = 40  ;;  %p295_p6 = scmp.le.s32.totalorder (!%p232_p3), %s757_s21, 8 }
   0x9   : > { %p838_p7 = pnand (!%p232_p3), %p295_p6, %p294_p5 }
   0xe   : > { %s280_s23 = scalar_select %p279_p4, %s757_s21, 9 }
   0xf   : > { %299 = sbr.rel (%p838_p7) target bundleno = 556 (0x22c), region = 44  ;;  %s659_s9 = sadd.s32 (!%p838_p7), 4294967295, %s757_s21  ;;  %v767_v0 = vmov (!%p838_p7), 0.0|0.0   ;;  %v391_v6 = vld [vmem:[%s918_s4 + $0x8] sm:$0xff] (!%p838_p7)  ;;  %vm419_vm0 = vcmask (!%p838_p7), 719872   ;;  %v776_v44 = vmov (!%p838_p7), 0.0  }
  0x10   : > { %s657_s25 = sshll.u32 %s280_s23, 2  ;;  %s658_s26 = sshll.u32 %s280_s23, 3  ;;  %668 = vmatprep.subr.bf16.mxu0 (!%p838_p7), %v767_v0  ;;  %664 = vmatprep.mubr.msk.f32.mxu0 (!%p838_p7), %vm419_vm0, %v391_v6  ;;  %v390_v45 = vld [vmem:[%s918_s4] sm:$0xff] (!%p838_p7)  ;;  %vm504_vm1 = vcmask (!%p838_p7), 7168   ;;  %vm509_vm2 = vcmask (!%p838_p7), 15368  }
  0x11   : > { %s845_s29 = scalar_lea.vmem %s919_s5, %s657_s25  ;;  %s850_s8 = scalar_lea.vmem %s920_s6, %s658_s26  ;;  %v665_v46 = vld [vmem:[%s917_s3] ss:$0 sm:$0xff] (!%p838_p7) }
  0x12   : > { %s660_s10 = sshll.u32 (!%p838_p7), %s659_s9, 2  ;;  %s768_s14 = smov (!%p838_p7), 9  }
  0x13   : > { %s303_s13 = scalar_lea.vmem (!%p838_p7), %s914_s0, %s660_s10  ;;  %s769_s15 = smov (!%p838_p7), 11  }
  0x14   : > { %v304_v1 = vld [vmem:[%s303_s13] sm:$0xf] (!%p838_p7)  ;;  %s661_s16 = sshll.u32 (!%p838_p7), %s757_s21, 2  ;;  %s770_s17 = smov (!%p838_p7), 1  }
  0x15   : > { %v305_v2 = vunpack.c.l.bf16 (!%p838_p7), %v304_v1  ;;  %s771_s18 = smov (!%p838_p7), 10   ;;  %s332_s23 = scalar_lea.vmem (!%p838_p7), %s914_s0, %s661_s16 }
  0x16   : > { %s772_s25 = smov 127   ;;  %s773_s26 = smov 119   ;;  %v333_v3 = vld [vmem:[%s332_s23] sm:$0xff]  }
  0x17   : > { %312 = vrot.lane.b32.xlu1 %v305_v2, %s768_s14  ;;  %306 = vrot.lane.b32.xlu0 %v305_v2, %s769_s15  ;;  %s774_s27 = smov 118   ;;  %s775_s28 = smov 117   ;;  %v334_v4 = vunpack.c.l.bf16 %v333_v3  ;;  %v865_v5 = vunpack.c.h.bf16 %v333_v3 }
  0x1b   : > { %315 = vrot.lane.b32.xlu1 %v305_v2, %s770_s17  ;;  %309 = vrot.lane.b32.xlu0 %v305_v2, %s771_s18 }
  0x1f   : > { %319 = vrot.lane.b32.xlu0 %v305_v2, %s772_s25  ;;  %322 = vrot.lane.b32.xlu1 %v305_v2, %s773_s26 }
  0x23   : > { %325 = vrot.lane.b32.xlu0 %v305_v2, %s774_s27  ;;  %328 = vrot.lane.b32.xlu1 %v305_v2, %s775_s28 }
  0x27   : > { %335 = vrot.lane.b32.xlu0 %v334_v4, %s769_s15  ;;  %338 = vrot.lane.b32.xlu1 %v334_v4, %s771_s18 }
  0x2b   : > { %341 = vrot.lane.b32.xlu0 %v334_v4, %s768_s14  ;;  %344 = vrot.lane.b32.xlu1 %v334_v4, %s770_s17 }
  0x2f   : > { %351 = vrot.lane.b32.xlu1 %v334_v4, %s773_s26  ;;  %348 = vrot.lane.b32.xlu0 %v334_v4, %s772_s25 }
  0x33   : > { %357 = vrot.lane.b32.xlu1 %v334_v4, %s775_s28  ;;  %354 = vrot.lane.b32.xlu0 %v334_v4, %s774_s27 }
  0x37   : > { %368 = vrot.lane.b32.xlu1 %v865_v5, %s771_s18  ;;  %365 = vrot.lane.b32.xlu0 %v865_v5, %s769_s15 }
  0x3b   : > { %374 = vrot.lane.b32.xlu1 %v865_v5, %s770_s17  ;;  %371 = vrot.lane.b32.xlu0 %v865_v5, %s768_s14 }
  0x3f   : > { %378 = vrot.lane.b32.xlu0 %v865_v5, %s772_s25  ;;  %381 = vrot.lane.b32.xlu1 %v865_v5, %s773_s26 }
  0x43   : > { %384 = vrot.lane.b32.xlu0 %v865_v5, %s774_s27  ;;  %387 = vrot.lane.b32.xlu1 %v865_v5, %s775_s28 }
  0x89   : > { %v313_v7 = vpop.permute.xlu1 %312  ;;  %v307_v8 = vpop.permute.xlu0 %306 }
  0x8d   : > { %v316_v9 = vpop.permute.xlu1 %315  ;;  %v310_v10 = vpop.permute.xlu0 %309 }
  0x8e   : > { %v669_v11 = vpack.c.bf16 %v310_v10, %v307_v8  ;;  %v672_v14 = vpack.c.bf16 %v316_v9, %v313_v7 }
  0x90   : > { %670 = vmatpush1.bf16.msra.mxu0 %v669_v11 }
  0x91   : > { %671 = vmatprep.subr.bf16.mxu0 %v767_v0  ;;  %v320_v12 = vpop.permute.xlu0 %319  ;;  %v323_v13 = vpop.permute.xlu1 %322 }
  0x92   : > { %v675_v15 = vpack.c.bf16 %v320_v12, %v305_v2 }
  0x94   : > { %673 = vmatpush1.bf16.msra.mxu0 %v672_v14 }
  0x95   : > { %674 = vmatprep.subr.bf16.mxu0 %v767_v0  ;;  %v326_v16 = vpop.permute.xlu0 %325  ;;  %v329_v17 = vpop.permute.xlu1 %328 }
  0x96   : > { %v678_v18 = vpack.c.bf16 %v326_v16, %v323_v13 }
  0x98   : > { %676 = vmatpush1.bf16.msra.mxu0 %v675_v15 }
  0x99   : > { %677 = vmatprep.subr.bf16.mxu0 %v767_v0  ;;  %v336_v19 = vpop.permute.xlu0 %335  ;;  %v339_v20 = vpop.permute.xlu1 %338 }
  0x9a   : > { %v681_v21 = vpack.c.bf16 %v336_v19, %v329_v17 }
  0x9c   : > { %679 = vmatpush1.bf16.msra.mxu0 %v678_v18 }
  0x9d   : > { %680 = vmatprep.subr.bf16.mxu0 %v767_v0  ;;  %v342_v22 = vpop.permute.xlu0 %341  ;;  %v345_v23 = vpop.permute.xlu1 %344 }
  0x9e   : > { %v684_v24 = vpack.c.bf16 %v342_v22, %v339_v20  ;;  %v687_v27 = vpack.c.bf16 %v334_v4, %v345_v23 }
  0xa0   : > { %682 = vmatpush1.bf16.msra.mxu0 %v681_v21 }
  0xa1   : > { %683 = vmatprep.subr.bf16.mxu0 %v767_v0  ;;  %v352_v25 = vpop.permute.xlu1 %351  ;;  %v349_v26 = vpop.permute.xlu0 %348 }
  0xa2   : > { %v690_v30 = vpack.c.bf16 %v352_v25, %v349_v26 }
  0xa4   : > { %685 = vmatpush1.bf16.msra.mxu0 %v684_v24 }
  0xa5   : > { %686 = vmatprep.subr.bf16.mxu0 %v767_v0  ;;  %v358_v28 = vpop.permute.xlu1 %357  ;;  %v355_v29 = vpop.permute.xlu0 %354 }
  0xa6   : > { %v693_v33 = vpack.c.bf16 %v358_v28, %v355_v29 }
  0xa8   : > { %688 = vmatpush1.bf16.msra.mxu0 %v687_v27 }
  0xa9   : > { %689 = vmatprep.subr.bf16.mxu0 %v767_v0  ;;  %v366_v31 = vpop.permute.xlu0 %365  ;;  %v369_v32 = vpop.permute.xlu1 %368 }
  0xaa   : > { %v696_v35 = vpack.c.bf16 %v369_v32, %v366_v31 }
  0xac   : > { %691 = vmatpush1.bf16.msra.mxu0 %v690_v30 }
  0xad   : > { %692 = vmatprep.subr.bf16.mxu0 %v767_v0  ;;  %v372_v34 = vpop.permute.xlu0 %371  ;;  %v375_v36 = vpop.permute.xlu1 %374 }
  0xae   : > { %v699_v38 = vpack.c.bf16 %v375_v36, %v372_v34 }
  0xb0   : > { %694 = vmatpush1.bf16.msra.mxu0 %v693_v33 }
  0xb1   : > { %695 = vmatprep.subr.bf16.mxu0 %v767_v0  ;;  %v379_v37 = vpop.permute.xlu0 %378  ;;  %v382_v40 = vpop.permute.xlu1 %381 }
  0xb2   : > { %v702_v39 = vpack.c.bf16 %v379_v37, %v865_v5 }
  0xb4   : > { %697 = vmatpush1.bf16.msra.mxu0 %v696_v35 }
  0xb5   : > { %698 = vmatprep.subr.bf16.mxu0 %v767_v0  ;;  %v385_v41 = vpop.permute.xlu0 %384  ;;  %v388_v43 = vpop.permute.xlu1 %387 }
  0xb6   : > { %v705_v42 = vpack.c.bf16 %v385_v41, %v382_v40 }
  0xb8   : > { %700 = vmatpush1.bf16.msra.mxu0 %v699_v38 }
  0xb9   : > { %701 = vmatprep.subr.bf16.mxu0 %v767_v0 }
  0xbc   : > { %703 = vmatpush1.bf16.msra.mxu0 %v702_v39 }
  0xbd   : > { %704 = vmatprep.subr.bf16.mxu0 %v767_v0 }
  0xc0   : > { %706 = vmatpush1.bf16.msra.mxu0 %v705_v42 }
  0xc1   : > { %475 = vmatprep.subr.mxu0 %v776_v44 }
  0xc4   : > { %476 = vmatpush1.msra.mxu0 %v388_v43 }
  0xc5   : > { %488 = vmatmul.mubr.f32.vlgmr.msra.gmra.mrb[0].mxu0 %v390_v45 }
 0x198   : > { %v489_v47 = vpop.f32.mrb[0].mxu0 }
 0x199   : > { %v499_v48 = vmul.f32 %v665_v46, %v489_v47  ;;  %v491_v49 = vpop.f32.mrb[1].mxu0 }
 0x19b   : > { %v500_v50 = vpack.c.bf16 %v499_v48, %v499_v48  ;;  %502 = vadd.xlane.f32.xlu0 %v499_v48  ;;  %v506_v51 = vmul.f32 %v499_v48, %v499_v48 }
 0x19d   : > { %501 = vst [vmem:[%s845_s29] sm:$0xf] %v500_v50  ;;  %507 = vadd.xlane.f32.xlu1 %v506_v51 }
 0x228   : > { %v503_v52 = vpop.xlane.xlu0 %502 }
 0x229   : > { %505 = vst.msk [vmem:[%s850_s8] sm:$0xff] %vm504_vm1, %v503_v52 }
 0x22a   : > { %v508_v53 = vpop.xlane.xlu1 %507 }
 0x22b   : > { %510 = vst.msk [vmem:[%s850_s8] sm:$0xff] %vm509_vm2, %v508_v53 }
 0x22c PF: > { %513 = sbr.rel (!%p838_p7) target bundleno = 563 (0x233), region = 48  ;;  %vm515_vm3 = vcmask (%p838_p7), 15360   ;;  %v777_v54 = vmov (%p838_p7), 0   ;;  %v778_v55 = vmov (%p838_p7), 0.0  }
 0x22d   : > { %514 = vst [vmem:[%s845_s29] sm:$0xf] (%p838_p7), %v777_v54  ;;  %516 = vst.msk [vmem:[%s850_s8] sm:$0xff] (%p838_p7), %vm515_vm3, %v778_v55 }
 0x233 PF: > { %s17_s1 = sadd.s32 1, %s765_s1   ;;  %s922_s21 = smov %s761_s22 }
 0x234   : > { %p14_p8 = scmp.ge.s32.totalorder %s17_s1, 12   ;;  %s923_s22 = smov %s925_s2 }
 0x236   :  { %16 = sbr.rel (!%p14_p8) target bundleno = 2 (0x2), region = 93 }

// kernel: decoder_forward.5
= control target key start
LH: loop header
LB: loop body
LE: loop exit
PB: predicated region body
PF: predicated region fallthrough
CT: control target
= control target key end

     0   :  { %s870_s21 = smov 0   ;;  %s872_s22 = smov 0   ;;  %s1010_s0 = inlined_call_operand.vmem [shape: bf16[1,10,8,128], index: 0, kind: input, shape index: {}]   ;;  %s1011_s1 = inlined_call_operand.vmem [shape: f32[8,1], index: 1, kind: input, shape index: {}]   ;;  %s1012_s2 = inlined_call_operand.vmem [shape: f32[8,1], index: 2, kind: input, shape index: {}]   ;;  %s1013_s3 = inlined_call_operand.vmem [shape: f32[1,128], index: 3, kind: input, shape index: {}]   ;;  %s1014_s4 = inlined_call_operand.vmem [shape: f32[4,216], index: 4, kind: input, shape index: {}]   ;;  %s1015_s5 = inlined_call_operand.vmem [shape: bf16[1,10,4,128], index: 5, kind: output, shape index: {0}]   ;;  %s1016_s6 = inlined_call_operand.vmem [shape: f32[1,10,4,2], index: 6, kind: output, shape index: {1}]  }
   0x1   :  { %s874_s23 = smov 0  }
   0x2 LB: > { %s26_s24 = sadd.s32 1, %s816_s22  ;;  %p707_p0 = scmp.ge.s32.totalorder %s820_s23, 1  ;;  %s820_s23 = sphi %s874_s23, %s17_s23   ;;  %s816_s22 = sphi %s872_s22, %s1019_s22   ;;  %s812_s21 = sphi %s870_s21, %s1018_s21  }
   0x3   : > { %p27_p1 = scmp.ge.s32.totalorder %s26_s24, 10  ;;  %p231_p2 = scmp.lt.s32.totalorder %s820_s23, 11 }
   0x5   : > { %s1021_s24 = smov (%p27_p1, %s26_s24), 0  ;;  %p232_p3 = pnand %p707_p0, %p231_p2 }
   0x6   : > { %p279_p4 = scmp.lt.s32.totalorder (!%p232_p3), %s812_s21, 9  ;;  %p294_p5 = scmp.ge.s32.totalorder (!%p232_p3), %s812_s21, 1 }
   0x7   : > { %235 = sbr.rel (%p232_p3) target bundleno = 692 (0x2b4), region = 40  ;;  %p295_p6 = scmp.le.s32.totalorder (!%p232_p3), %s812_s21, 8 }
   0x9   : > { %p894_p7 = pnand (!%p232_p3), %p295_p6, %p294_p5 }
   0xe   : > { %s280_s25 = scalar_select %p279_p4, %s812_s21, 9 }
   0xf   : > { %299 = sbr.rel (%p894_p7) target bundleno = 685 (0x2ad), region = 44  ;;  %v306_v0 = vld [vmem:[%s1011_s1] sm:$0xff] (!%p894_p7)  ;;  %v822_v1 = vmov (!%p894_p7), 0   ;;  %s710_s15 = sadd.s32 (!%p894_p7), 4294967295, %s812_s21  ;;  %v823_v5 = vmov (!%p894_p7), 0.0|0.0   ;;  %vm474_vm0 = vcmask (!%p894_p7), 719872  }
  0x10   : > { %s708_s27 = sshll.u32 %s280_s25, 1  ;;  %s709_s28 = sshll.u32 %s280_s25, 2  ;;  %795 = vset.pattern.permute.xlu0 (!%p894_p7), %v822_v1  ;;  %796 = vset.pattern.permute.xlu1 (!%p894_p7), %v822_v1  ;;  %v313_v2 = vld [vmem:[%s1012_s2] sm:$0xff] (!%p894_p7)  ;;  %vm550_vm1 = vcmask (!%p894_p7), 1043456   ;;  %vm554_vm2 = vcmask (!%p894_p7), 3072   ;;  %vm560_vm3 = vcmask (!%p894_p7), 11272  }
  0x11   : > { %s901_s7 = scalar_lea.vmem %s1015_s5, %s708_s27  ;;  %s906_s10 = scalar_lea.vmem %s1016_s6, %s709_s28  ;;  %309 = vperm.xlu0 (!%p894_p7), %795, %v306_v0   ;;  %360 = vperm.xlu1 (!%p894_p7), %796, %v306_v0   ;;  %v928_v10 = vld [vmem:[%s1013_s3] ss:$0 sm:$0xff] (!%p894_p7) }
  0x12   : > { %s711_s16 = sshll.u32 (!%p894_p7), %s710_s15, 2  ;;  %719 = vmatprep.subr.bf16.mxu0 (!%p894_p7), %v823_v5  ;;  %s713_s20 = sshll.u32 (!%p894_p7), %s812_s21, 2  ;;  %v968_v28 = vld [vmem:[%s1014_s4] sm:$0xff] (!%p894_p7) }
  0x13   : > { %s303_s19 = scalar_lea.vmem (!%p894_p7), %s1010_s0, %s711_s16  ;;  %s354_s28 = scalar_lea.vmem (!%p894_p7), %s1010_s0, %s713_s20  ;;  %v473_v29 = vcombine.high (!%p894_p7), %v968_v28, %v968_v28 }
  0x14   : > { %v304_v3 = vld [vmem:[%s303_s19] sm:$0xf] (!%p894_p7)  ;;  %s824_s21 = smov (!%p894_p7), 10   ;;  %s825_s8 = smov (!%p894_p7), 11  }
  0x15   : > { %316 = vperm.xlu0 (!%p894_p7), %795, %v313_v2   ;;  %367 = vperm.xlu1 (!%p894_p7), %796, %v313_v2   ;;  %v305_v4 = vunpack.c.l.bf16 (!%p894_p7), %v304_v3  ;;  %v355_v12 = vld [vmem:[%s354_s28] sm:$0xff] (!%p894_p7)   ;;  %s826_s9 = smov (!%p894_p7), 1   ;;  %s827_s11 = smov (!%p894_p7), 9  }
  0x16   : > { %v356_v13 = vunpack.c.l.bf16 %v355_v12  ;;  %s828_s12 = smov 119   ;;  %s829_s13 = smov 127   ;;  %v402_v21 = vunpack.c.h.bf16 %v355_v12  ;;  %716 = vmatprep.mubr.msk.f32.mxu0 %vm474_vm0, %v473_v29 }
  0x17   : > { %s830_s14 = smov 117   ;;  %s831_s15 = smov 118  }
  0x19   : > { %406 = vperm.xlu0 %795, %v306_v0   ;;  %413 = vperm.xlu1 %796, %v313_v2   ;;  %v832_v2 = vmov 0.0  }
  0x90   : > { %v310_v6 = vpop.permute.xlu0 %309  ;;  %v361_v15 = vpop.permute.xlu1 %360 }
  0x91   : > { %v312_v7 = vmul.f32 %v310_v6, %v305_v4  ;;  %v363_v16 = vmul.f32 %v361_v15, %v356_v13 }
  0x94   : > { %v317_v8 = vpop.permute.xlu0 %316  ;;  %v368_v17 = vpop.permute.xlu1 %367 }
  0x95   : > { %v319_v9 = vadd.f32 %v317_v8, %v312_v7  ;;  %v370_v18 = vadd.f32 %v368_v17, %v363_v16 }
  0x97   : > { %v320_v11 = vmax.f32 %v319_v9, 0.0  ;;  %v371_v19 = vmax.f32 %v370_v18, 0.0 }
  0x98   : > { %v407_v22 = vpop.permute.xlu0 %406  ;;  %v414_v24 = vpop.permute.xlu1 %413 }
  0x99   : > { %v931_v14 = vmul.f32 %v928_v10, %v320_v11  ;;  %v372_v20 = vmul.f32 %v928_v10, %v371_v19  ;;  %v409_v23 = vmul.f32 %v407_v22, %v402_v21 }
  0x9b   : > { %331 = vrot.lane.b32.xlu1 %v931_v14, %s824_s21  ;;  %328 = vrot.lane.b32.xlu0 %v931_v14, %s825_s8  ;;  %v416_v25 = vadd.f32 %v414_v24, %v409_v23 }
  0x9d   : > { %v417_v26 = vmax.f32 %v416_v25, 0.0 }
  0x9f   : > { %337 = vrot.lane.b32.xlu1 %v931_v14, %s826_s9  ;;  %334 = vrot.lane.b32.xlu0 %v931_v14, %s827_s11  ;;  %v955_v27 = vmul.f32 %v928_v10, %v417_v26 }
  0xa3   : > { %344 = vrot.lane.b32.xlu1 %v931_v14, %s828_s12  ;;  %341 = vrot.lane.b32.xlu0 %v931_v14, %s829_s13 }
  0xa7   : > { %350 = vrot.lane.b32.xlu1 %v931_v14, %s830_s14  ;;  %347 = vrot.lane.b32.xlu0 %v931_v14, %s831_s15 }
  0xab   : > { %376 = vrot.lane.b32.xlu1 %v372_v20, %s824_s21  ;;  %373 = vrot.lane.b32.xlu0 %v372_v20, %s825_s8 }
  0xaf   : > { %382 = vrot.lane.b32.xlu1 %v372_v20, %s826_s9  ;;  %379 = vrot.lane.b32.xlu0 %v372_v20, %s827_s11 }
  0xb3   : > { %389 = vrot.lane.b32.xlu1 %v372_v20, %s828_s12  ;;  %386 = vrot.lane.b32.xlu0 %v372_v20, %s829_s13 }
  0xb7   : > { %395 = vrot.lane.b32.xlu1 %v372_v20, %s830_s14  ;;  %392 = vrot.lane.b32.xlu0 %v372_v20, %s831_s15 }
  0xbb   : > { %422 = vrot.lane.b32.xlu1 %v955_v27, %s824_s21  ;;  %419 = vrot.lane.b32.xlu0 %v955_v27, %s825_s8 }
  0xbf   : > { %428 = vrot.lane.b32.xlu1 %v955_v27, %s826_s9  ;;  %425 = vrot.lane.b32.xlu0 %v955_v27, %s827_s11 }
  0xc3   : > { %435 = vrot.lane.b32.xlu1 %v955_v27, %s828_s12  ;;  %432 = vrot.lane.b32.xlu0 %v955_v27, %s829_s13 }
  0xc7   : > { %441 = vrot.lane.b32.xlu1 %v955_v27, %s830_s14  ;;  %438 = vrot.lane.b32.xlu0 %v955_v27, %s831_s15 }
 0x10d   : > { %v332_v30 = vpop.permute.xlu1 %331  ;;  %v329_v31 = vpop.permute.xlu0 %328 }
 0x10e   : > { %v720_v32 = vpack.c.bf16 %v332_v30, %v329_v31 }
 0x110   : > { %721 = vmatpush1.bf16.msra.mxu0 %v720_v32 }
 0x111   : > { %v338_v33 = vpop.permute.xlu1 %337  ;;  %v335_v34 = vpop.permute.xlu0 %334  ;;  %722 = vmatprep.subr.bf16.mxu0 %v823_v5 }
 0x112   : > { %v723_v35 = vpack.c.bf16 %v338_v33, %v335_v34 }
 0x114   : > { %724 = vmatpush1.bf16.msra.mxu0 %v723_v35 }
 0x115   : > { %v345_v36 = vpop.permute.xlu1 %344  ;;  %v342_v37 = vpop.permute.xlu0 %341  ;;  %725 = vmatprep.subr.bf16.mxu0 %v823_v5 }
 0x116   : > { %v726_v38 = vpack.c.bf16 %v342_v37, %v931_v14 }
 0x118   : > { %727 = vmatpush1.bf16.msra.mxu0 %v726_v38 }
 0x119   : > { %v351_v39 = vpop.permute.xlu1 %350  ;;  %v348_v40 = vpop.permute.xlu0 %347  ;;  %728 = vmatprep.subr.bf16.mxu0 %v823_v5 }
 0x11a   : > { %v729_v41 = vpack.c.bf16 %v348_v40, %v345_v36 }
 0x11c   : > { %730 = vmatpush1.bf16.msra.mxu0 %v729_v41 }
 0x11d   : > { %v377_v42 = vpop.permute.xlu1 %376  ;;  %v374_v43 = vpop.permute.xlu0 %373  ;;  %731 = vmatprep.subr.bf16.mxu0 %v823_v5 }
 0x11e   : > { %v732_v44 = vpack.c.bf16 %v374_v43, %v351_v39 }
 0x120   : > { %733 = vmatpush1.bf16.msra.mxu0 %v732_v44 }
 0x121   : > { %v383_v45 = vpop.permute.xlu1 %382  ;;  %v380_v46 = vpop.permute.xlu0 %379  ;;  %734 = vmatprep.subr.bf16.mxu0 %v823_v5 }
 0x122   : > { %v735_v47 = vpack.c.bf16 %v380_v46, %v377_v42  ;;  %v738_v50 = vpack.c.bf16 %v372_v20, %v383_v45 }
 0x124   : > { %736 = vmatpush1.bf16.msra.mxu0 %v735_v47 }
 0x125   : > { %v390_v48 = vpop.permute.xlu1 %389  ;;  %v387_v49 = vpop.permute.xlu0 %386  ;;  %737 = vmatprep.subr.bf16.mxu0 %v823_v5 }
 0x126   : > { %v741_v53 = vpack.c.bf16 %v390_v48, %v387_v49 }
 0x128   : > { %739 = vmatpush1.bf16.msra.mxu0 %v738_v50 }
 0x129   : > { %v396_v51 = vpop.permute.xlu1 %395  ;;  %v393_v52 = vpop.permute.xlu0 %392  ;;  %740 = vmatprep.subr.bf16.mxu0 %v823_v5 }
 0x12a   : > { %v744_v56 = vpack.c.bf16 %v396_v51, %v393_v52 }
 0x12c   : > { %742 = vmatpush1.bf16.msra.mxu0 %v741_v53 }
 0x12d   : > { %v423_v54 = vpop.permute.xlu1 %422  ;;  %v420_v55 = vpop.permute.xlu0 %419  ;;  %743 = vmatprep.subr.bf16.mxu0 %v823_v5 }
 0x12e   : > { %v747_v58 = vpack.c.bf16 %v423_v54, %v420_v55 }
 0x130   : > { %745 = vmatpush1.bf16.msra.mxu0 %v744_v56 }
 0x131   : > { %v426_v57 = vpop.permute.xlu0 %425  ;;  %746 = vmatprep.subr.bf16.mxu0 %v823_v5  ;;  %v429_v59 = vpop.permute.xlu1 %428 }
 0x132   : > { %v750_v61 = vpack.c.bf16 %v429_v59, %v426_v57 }
 0x134   : > { %748 = vmatpush1.bf16.msra.mxu0 %v747_v58 }
 0x135   : > { %v433_v60 = vpop.permute.xlu0 %432  ;;  %749 = vmatprep.subr.bf16.mxu0 %v823_v5  ;;  %v436_v0 = vpop.permute.xlu1 %435 }
 0x136   : > { %v753_v62 = vpack.c.bf16 %v433_v60, %v955_v27 }
 0x138   : > { %751 = vmatpush1.bf16.msra.mxu0 %v750_v61 }
 0x139   : > { %752 = vmatprep.subr.bf16.mxu0 %v823_v5  ;;  %v439_v63 = vpop.permute.xlu0 %438  ;;  %v442_v3 = vpop.permute.xlu1 %441 }
 0x13a   : > { %v756_v1 = vpack.c.bf16 %v439_v63, %v436_v0 }
 0x13c   : > { %754 = vmatpush1.bf16.msra.mxu0 %v753_v62 }
 0x13d   : > { %755 = vmatprep.subr.bf16.mxu0 %v823_v5 }
 0x140   : > { %757 = vmatpush1.bf16.msra.mxu0 %v756_v1 }
 0x141   : > { %529 = vmatprep.subr.mxu0 %v832_v2 }
 0x144   : > { %530 = vmatpush1.msra.mxu0 %v442_v3 }
 0x145   : > { %542 = vmatmul.mubr.f32.vlgmr.msra.gmra.mrb[0].mxu0 %v968_v28 }
 0x218   : > { %v543_v4 = vpop.f32.mrb[0].mxu0 }
 0x219   : > { %v547_v6 = vmul.f32 %v928_v10, %v543_v4  ;;  %v545_v7 = vpop.f32.mrb[1].mxu0 }
 0x21b   : > { %v548_v8 = vpack.c.bf16 %v547_v6, %v547_v6  ;;  %v551_v9 = vsel %vm550_vm1, %v547_v6, 0.0  ;;  %v556_v11 = vmul.f32 %v547_v6, %v547_v6 }
 0x21c   : > { %552 = vadd.xlane.f32.xlu0 %v551_v9 }
 0x21d   : > { %549 = vst [vmem:[%s901_s7] sm:$0x3] %v548_v8  ;;  %v557_v5 = vsel %vm550_vm1, %v556_v11, 0.0 }
 0x21e   : > { %558 = vadd.xlane.f32.xlu1 %v557_v5 }
 0x2a9   : > { %v553_v12 = vpop.xlane.xlu0 %552 }
 0x2aa   : > { %555 = vst.msk [vmem:[%s906_s10] sm:$0xf] %vm554_vm2, %v553_v12 }
 0x2ab   : > { %v559_v13 = vpop.xlane.xlu1 %558 }
 0x2ac   : > { %561 = vst.msk [vmem:[%s906_s10] sm:$0xf] %vm560_vm3, %v559_v13 }
 0x2ad PF: > { %564 = sbr.rel (!%p894_p7) target bundleno = 692 (0x2b4), region = 48  ;;  %vm566_vm4 = vcmask (%p894_p7), 11264   ;;  %v833_v10 = vmov (%p894_p7), 0   ;;  %v834_v14 = vmov (%p894_p7), 0.0  }
 0x2ae   : > { %565 = vst [vmem:[%s901_s7] sm:$0x3] (%p894_p7), %v833_v10  ;;  %567 = vst.msk [vmem:[%s906_s10] sm:$0xf] (%p894_p7), %vm566_vm4, %v834_v14 }
 0x2b4 PF: > { %s17_s23 = sadd.s32 1, %s820_s23   ;;  %s1018_s21 = smov %s816_s22 }
 0x2b5   : > { %p14_p8 = scmp.ge.s32.totalorder %s17_s23, 12   ;;  %s1019_s22 = smov %s1021_s24 }
 0x2b7   :  { %16 = sbr.rel (!%p14_p8) target bundleno = 2 (0x2), region = 93 }

// kernel: decoder_forward.7
= control target key start
LH: loop header
LB: loop body
LE: loop exit
PB: predicated region body
PF: predicated region fallthrough
CT: control target
= control target key end

     0   :  { %s594_s21 = smov 0   ;;  %s596_s22 = smov 0   ;;  %s647_s0 = inlined_call_operand.vmem [shape: bf16[1,10,4,128], index: 0, kind: input, shape index: {}]   ;;  %s648_s1 = inlined_call_operand.vmem [shape: f32[4,1], index: 1, kind: input, shape index: {}]   ;;  %s649_s2 = inlined_call_operand.vmem [shape: f32[4,1], index: 2, kind: input, shape index: {}]   ;;  %s650_s3 = inlined_call_operand.vmem [shape: f32[1,128], index: 3, kind: input, shape index: {}]   ;;  %s651_s4 = inlined_call_operand.vmem [shape: f32[2,4], index: 4, kind: input, shape index: {}]   ;;  %s652_s5 = inlined_call_operand.vmem [shape: f32[2,1], index: 5, kind: input, shape index: {}]   ;;  %s653_s6 = inlined_call_operand.vmem [shape: f32[1,8,2,128], index: 6, kind: output, shape index: {}]  }
   0x1   :  { %s598_s23 = smov 0  }
   0x2 LB: > { %s25_s24 = sadd.s32 1, %s550_s22  ;;  %p488_p0 = scmp.ge.s32.totalorder %s554_s23, 1  ;;  %s554_s23 = sphi %s598_s23, %s16_s23   ;;  %s550_s22 = sphi %s596_s22, %s655_s22   ;;  %s546_s21 = sphi %s594_s21, %s654_s21  }
   0x3   : > { %p26_p1 = scmp.ge.s32.totalorder %s25_s24, 8  ;;  %p235_p2 = scmp.lt.s32.totalorder %s554_s23, 9 }
   0x5   : > { %s657_s24 = smov (%p26_p1, %s25_s24), 0  ;;  %p236_p3 = pnand %p488_p0, %p235_p2 }
   0x6   : > { %v292_v0 = vld [vmem:[%s648_s1] sm:$0xf] (!%p236_p3)  ;;  %v556_v1 = vmov (!%p236_p3), 0   ;;  %v557_v3 = vmov (!%p236_p3), 0.0   ;;  %vm558_vm0 = vmmov (!%p236_p3), 0   ;;  %s272_s7 = sadd.s32 (!%p236_p3), 1, %s546_s21 }
   0x7   : > { %239 = sbr.rel (%p236_p3) target bundleno = 362 (0x16a), region = 44  ;;  %530 = vset.pattern.permute.xlu0 (!%p236_p3), %v556_v1  ;;  %531 = vset.pattern.permute.xlu1 (!%p236_p3), %v556_v1  ;;  %v299_v2 = vld [vmem:[%s649_s2] sm:$0xf] (!%p236_p3)  ;;  %p275_p4 = scmp.lt.s32.totalorder (!%p236_p3), %s272_s7, 9  ;;  %vm326_vm1 = vcmask (!%p236_p3), 1043456   ;;  %vm322_vm2 = vcmask (!%p236_p3), 31744  }
   0x8   : > { %295 = vperm.xlu0 (!%p236_p3), %530, %v292_v0   ;;  %498 = vmatprep.subr.mxu0 (!%p236_p3), %v557_v3  ;;  %v316_v4 = vld [vmem:[%s652_s5] sm:$0x3] (!%p236_p3)  ;;  %p284_p5 = scmp.lt.s32.totalorder (!%p236_p3), %s546_s21, 7 }
   0x9   : > { %500 = vmatprep.mubr.msk.f32.mxu0 (!%p236_p3), %vm558_vm0, %v557_v3  ;;  %319 = vperm.xlu1 (!%p236_p3), %531, %v316_v4   ;;  %v491_v11 = vld [vmem:[%s650_s3] ss:$0 sm:$0xff] (!%p236_p3) }
   0xa   : > { %v315_v14 = vld [vmem:[%s651_s4] sm:$0x3] (!%p236_p3) }
   0xc   : > { %302 = vperm.xlu0 (!%p236_p3), %530, %v299_v2  }
   0xe   : > { %s659_s7 = smov (!%p275_p4, %s272_s7), 9  ;;  %s661_s21 = smov (!%p284_p5, %s546_s21), 7 }
   0xf   : > { %s489_s8 = sshll.u32 %s659_s7, 1  ;;  %s490_s16 = sshll.u32 %s661_s21, 1 }
  0x10   : > { %s280_s11 = scalar_lea.vmem %s647_s0, %s489_s8  ;;  %s289_s19 = scalar_lea.vmem %s653_s6, %s490_s16 }
  0x11   : > { %v290_v5 = vld [vmem:[%s280_s11] sm:$0x3] }
  0x12   : > { %v291_v6 = vunpack.c.l.bf16 %v290_v5 }
  0x87   : > { %v296_v7 = vpop.permute.xlu0 %295 }
  0x88   : > { %v298_v8 = vmul.f32 %v296_v7, %v291_v6  ;;  %v320_v15 = vpop.permute.xlu1 %319 }
  0x8b   : > { %v303_v9 = vpop.permute.xlu0 %302 }
  0x8c   : > { %v305_v10 = vadd.f32 %v303_v9, %v298_v8 }
  0x8e   : > { %v306_v12 = vmax.f32 %v305_v10, 0.0 }
  0x90   : > { %v314_v13 = vmul.f32 %v491_v11, %v306_v12 }
  0x92   : > { %499 = vmatpush3.msk.msra.mxu0 %vm326_vm1, %v314_v13 }
  0x93   : > { %501 = vmatmul.mubr.msk.f32.vlgmr.msra.gmra.mrb[0].mxu0 %vm322_vm2, %v315_v14 }
 0x166   : > { %v396_v16 = vpop.f32.mrb[0].mxu0 }
 0x167   : > { %v397_v17 = vadd.f32 %v396_v16, %v320_v15  ;;  %v502_v18 = vpop.f32.mrb[1].mxu0 }
 0x169   : > { %400 = vst [vmem:[%s289_s19] sm:$0x3] %v397_v17 }
 0x16a PF: > { %s16_s23 = sadd.s32 1, %s554_s23   ;;  %s654_s21 = smov %s550_s22 }
 0x16b   : > { %p13_p6 = scmp.ge.s32.totalorder %s16_s23, 10   ;;  %s655_s22 = smov %s657_s24 }
 0x16d   :  { %15 = sbr.rel (!%p13_p6) target bundleno = 2 (0x2), region = 74 }

// kernel: decoder_forward.6
= control target key start
LH: loop header
LB: loop body
LE: loop exit
PB: predicated region body
PF: predicated region fallthrough
CT: control target
= control target key end

     0   :  { %s892_s21 = smov 0   ;;  %s894_s22 = smov 0   ;;  %s996_s0 = inlined_call_operand.vmem [shape: bf16[1,10,4,128], index: 0, kind: input, shape index: {}]   ;;  %s997_s1 = inlined_call_operand.vmem [shape: f32[4,1], index: 1, kind: input, shape index: {}]   ;;  %s998_s2 = inlined_call_operand.vmem [shape: f32[4,1], index: 2, kind: input, shape index: {}]   ;;  %s999_s3 = inlined_call_operand.vmem [shape: f32[1,128], index: 3, kind: input, shape index: {}]   ;;  %s1000_s4 = inlined_call_operand.vmem [shape: f32[4,108], index: 4, kind: input, shape index: {}]   ;;  %s1001_s5 = inlined_call_operand.vmem [shape: bf16[1,10,4,128], index: 5, kind: output, shape index: {0}]   ;;  %s1002_s6 = inlined_call_operand.vmem [shape: f32[1,10,4,2], index: 6, kind: output, shape index: {1}]  }
   0x1   :  { %s896_s23 = smov 0  }
   0x2 LB: > { %s26_s24 = sadd.s32 1, %s836_s22  ;;  %p696_p0 = scmp.ge.s32.totalorder %s840_s23, 1  ;;  %s840_s23 = sphi %s896_s23, %s17_s23   ;;  %s836_s22 = sphi %s894_s22, %s1005_s22   ;;  %s832_s21 = sphi %s892_s21, %s1004_s21  }
   0x3   : > { %p27_p1 = scmp.ge.s32.totalorder %s26_s24, 10  ;;  %p231_p2 = scmp.lt.s32.totalorder %s840_s23, 11 }
   0x5   : > { %s1007_s24 = smov (%p27_p1, %s26_s24), 0  ;;  %p232_p3 = pnand %p696_p0, %p231_p2 }
   0x6   : > { %p279_p4 = scmp.lt.s32.totalorder (!%p232_p3), %s832_s21, 9  ;;  %p294_p5 = scmp.ge.s32.totalorder (!%p232_p3), %s832_s21, 1 }
   0x7   : > { %235 = sbr.rel (%p232_p3) target bundleno = 694 (0x2b6), region = 40  ;;  %p295_p6 = scmp.le.s32.totalorder (!%p232_p3), %s832_s21, 8 }
   0x9   : > { %p916_p7 = pnand (!%p232_p3), %p295_p6, %p294_p5 }
   0xe   : > { %s280_s25 = scalar_select %p279_p4, %s832_s21, 9 }
   0xf   : > { %299 = sbr.rel (%p916_p7) target bundleno = 687 (0x2af), region = 44  ;;  %v306_v0 = vld [vmem:[%s997_s1] sm:$0xf] (!%p916_p7)  ;;  %v842_v2 = vmov (!%p916_p7), 0   ;;  %s702_s30 = sshll.u32 (!%p916_p7), %s832_s21, 1  ;;  %v845_v30 = vmov (!%p916_p7), 0.0|0.0  }
  0x10   : > { %s697_s27 = sshll.u32 %s280_s25, 1  ;;  %s698_s28 = sshll.u32 %s280_s25, 2  ;;  %v357_v1 = vld [vmem:[%s997_s1] sm:$0xf] (!%p916_p7)  ;;  %816 = vset.pattern.permute.xlu0 (!%p916_p7), %v842_v2  ;;  %817 = vset.pattern.permute.xlu1 (!%p916_p7), %v842_v2  ;;  %vm852_vm0 = vmmov (!%p916_p7), 0   ;;  %v853_v33 = vmov (!%p916_p7), 0.0  }
  0x11   : > { %s923_s7 = scalar_lea.vmem %s1001_s5, %s697_s27  ;;  %s928_s10 = scalar_lea.vmem %s1002_s6, %s698_s28  ;;  %309 = vperm.xlu0 (!%p916_p7), %816, %v306_v0   ;;  %360 = vperm.xlu1 (!%p916_p7), %817, %v357_v1   ;;  %v313_v3 = vld [vmem:[%s998_s2] sm:$0xf] (!%p916_p7)  ;;  %vm463_vm1 = vcmask (!%p916_p7), 1043456   ;;  %vm854_vm2 = vmmov (!%p916_p7), 1   ;;  %vm459_vm4 = vcmask (!%p916_p7), 883712   ;;  %vm543_vm5 = vcmask (!%p916_p7), 3072  }
  0x12   : > { %v364_v4 = vld [vmem:[%s998_s2] sm:$0xf] (!%p916_p7)  ;;  %s699_s28 = sadd.s32 (!%p916_p7), 4294967295, %s832_s21  ;;  %s354_s14 = scalar_lea.vmem (!%p916_p7), %s996_s0, %s702_s30  ;;  %755 = vmatprep.subr.bf16.mxu0 (!%p916_p7), %v845_v30  ;;  %752 = vmatprep.mubr.msk.f32.mxu0 (!%p916_p7), %vm852_vm0, %v853_v33  ;;  %vm775_vm3 = vmpackc.low (!%p916_p7), %vm463_vm1, %vm854_vm2  ;;  %vm549_vm6 = vcmask (!%p916_p7), 11272  }
  0x13   : > { %v403_v5 = vld [vmem:[%s997_s1] sm:$0xf] (!%p916_p7)  ;;  %s700_s29 = sshll.u32 (!%p916_p7), %s699_s28, 1  ;;  %s843_s16 = smov (!%p916_p7), 10  }
  0x14   : > { %v410_v6 = vld [vmem:[%s998_s2] sm:$0xf] (!%p916_p7)  ;;  %s303_s11 = scalar_lea.vmem (!%p916_p7), %s996_s0, %s700_s29  ;;  %s844_s17 = smov (!%p916_p7), 11  }
  0x15   : > { %316 = vperm.xlu0 (!%p916_p7), %816, %v313_v3   ;;  %367 = vperm.xlu1 (!%p916_p7), %817, %v364_v4   ;;  %v355_v7 = vld [vmem:[%s354_s14] sm:$0x3] (!%p916_p7)  ;;  %v704_v14 = vld [vmem:[%s354_s14 + $0x2] sm:$0x3] (!%p916_p7)  ;;  %s846_s18 = smov (!%p916_p7), 1   ;;  %s847_s19 = smov (!%p916_p7), 9  }
  0x16   : > { %v304_v8 = vld [vmem:[%s303_s11] sm:$0x3]  ;;  %v356_v9 = vunpack.c.l.bf16 %v355_v7  ;;  %v402_v20 = vunpack.c.l.bf16 %v704_v14  ;;  %s848_s20 = smov 119   ;;  %s849_s25 = smov 127  }
  0x17   : > { %v305_v10 = vunpack.c.l.bf16 %v304_v8  ;;  %v961_v21 = vld [vmem:[%s999_s3] ss:$0 sm:$0xff]  ;;  %s850_s27 = smov 117   ;;  %s851_s28 = smov 118  }
  0x19   : > { %406 = vperm.xlu0 %816, %v403_v5   ;;  %413 = vperm.xlu1 %817, %v410_v6  }
  0x90   : > { %v310_v11 = vpop.permute.xlu0 %309  ;;  %v361_v12 = vpop.permute.xlu1 %360 }
  0x91   : > { %v363_v13 = vmul.f32 %v361_v12, %v356_v9  ;;  %v312_v15 = vmul.f32 %v310_v11, %v305_v10 }
  0x94   : > { %v317_v16 = vpop.permute.xlu0 %316  ;;  %v368_v17 = vpop.permute.xlu1 %367 }
  0x95   : > { %v319_v18 = vadd.f32 %v317_v16, %v312_v15  ;;  %v370_v19 = vadd.f32 %v368_v17, %v363_v13  ;;  %v444_v15 = vld [vmem:[%s1000_s4] sm:$0xf] }
  0x97   : > { %v320_v22 = vmax.f32 %v319_v18, 0.0  ;;  %v371_v23 = vmax.f32 %v370_v19, 0.0 }
  0x98   : > { %v407_v24 = vpop.permute.xlu0 %406  ;;  %v414_v25 = vpop.permute.xlu1 %413 }
  0x99   : > { %v327_v26 = vmul.f32 %v961_v21, %v320_v22  ;;  %v372_v27 = vmul.f32 %v961_v21, %v371_v23  ;;  %v409_v28 = vmul.f32 %v407_v24, %v402_v20 }
  0x9b   : > { %340 = vst [vmem:[#allocation2 + $0x10] sm:$0xf] %v327_v26  ;;  %385 = vst [vmem:[#allocation2 + $0x34] sm:$0xf] %v372_v27  ;;  %v416_v29 = vadd.f32 %v414_v25, %v409_v28  ;;  %331 = vrot.lane.b32.xlu1 %v327_v26, %s843_s16  ;;  %328 = vrot.lane.b32.xlu0 %v327_v26, %s844_s17 }
  0x9d   : > { %v417_v31 = vmax.f32 %v416_v29, 0.0 }
  0x9f   : > { %v418_v32 = vmul.f32 %v961_v21, %v417_v31  ;;  %337 = vrot.lane.b32.xlu1 %v327_v26, %s846_s18  ;;  %334 = vrot.lane.b32.xlu0 %v327_v26, %s847_s19 }
  0xa1   : > { %431 = vst [vmem:[#allocation2 + $0x58] sm:$0xf] %v418_v32 }
  0xa3   : > { %344 = vrot.lane.b32.xlu1 %v327_v26, %s848_s20  ;;  %341 = vrot.lane.b32.xlu0 %v327_v26, %s849_s25 }
  0xa7   : > { %350 = vrot.lane.b32.xlu1 %v327_v26, %s850_s27  ;;  %347 = vrot.lane.b32.xlu0 %v327_v26, %s851_s28 }
  0xab   : > { %376 = vrot.lane.b32.xlu1 %v372_v27, %s843_s16  ;;  %373 = vrot.lane.b32.xlu0 %v372_v27, %s844_s17 }
  0xaf   : > { %382 = vrot.lane.b32.xlu1 %v372_v27, %s846_s18  ;;  %379 = vrot.lane.b32.xlu0 %v372_v27, %s847_s19 }
  0xb3   : > { %389 = vrot.lane.b32.xlu1 %v372_v27, %s848_s20  ;;  %386 = vrot.lane.b32.xlu0 %v372_v27, %s849_s25 }
  0xb7   : > { %395 = vrot.lane.b32.xlu1 %v372_v27, %s850_s27  ;;  %392 = vrot.lane.b32.xlu0 %v372_v27, %s851_s28 }
  0xbb   : > { %422 = vrot.lane.b32.xlu1 %v418_v32, %s843_s16  ;;  %419 = vrot.lane.b32.xlu0 %v418_v32, %s844_s17 }
  0xbf   : > { %428 = vrot.lane.b32.xlu1 %v418_v32, %s846_s18  ;;  %425 = vrot.lane.b32.xlu0 %v418_v32, %s847_s19 }
  0xc3   : > { %435 = vrot.lane.b32.xlu1 %v418_v32, %s848_s20  ;;  %432 = vrot.lane.b32.xlu0 %v418_v32, %s849_s25 }
  0xc7   : > { %441 = vrot.lane.b32.xlu1 %v418_v32, %s850_s27  ;;  %438 = vrot.lane.b32.xlu0 %v418_v32, %s851_s28 }
 0x10d   : > { %v332_v34 = vpop.permute.xlu1 %331  ;;  %v329_v35 = vpop.permute.xlu0 %328 }
 0x10e   : > { %333 = vst [vmem:[#allocation2 + $0x4] sm:$0xf] %v332_v34  ;;  %330 = vst [vmem:[#allocation2] sm:$0xf] %v329_v35 }
 0x111   : > { %v338_v36 = vpop.permute.xlu1 %337  ;;  %v335_v37 = vpop.permute.xlu0 %334 }
 0x112   : > { %339 = vst [vmem:[#allocation2 + $0xc] sm:$0xf] %v338_v36  ;;  %336 = vst [vmem:[#allocation2 + $0x8] sm:$0xf] %v335_v37 }
 0x115   : > { %v345_v38 = vpop.permute.xlu1 %344  ;;  %v342_v39 = vpop.permute.xlu0 %341  ;;  %v445_v42 = vld [vmem:[#allocation2] sm:$0xff] }
 0x116   : > { %346 = vst [vmem:[#allocation2 + $0x18] sm:$0xf] %v345_v38  ;;  %343 = vst [vmem:[#allocation2 + $0x14] sm:$0xf] %v342_v39 }
 0x119   : > { %v351_v40 = vpop.permute.xlu1 %350  ;;  %v348_v41 = vpop.permute.xlu0 %347  ;;  %v446_v43 = vld [vmem:[#allocation2 + $0x8] sm:$0xff] }
 0x11a   : > { %352 = vst [vmem:[#allocation2 + $0x20] sm:$0xf] %v351_v40  ;;  %349 = vst [vmem:[#allocation2 + $0x1c] sm:$0xf] %v348_v41  ;;  %v756_v44 = vpack.c.bf16 %v446_v43, %v445_v42 }
 0x11c   : > { %757 = vmatpush3.bf16.msra.mxu0 %v756_v44 }
 0x11d   : > { %v377_v45 = vpop.permute.xlu1 %376  ;;  %v374_v46 = vpop.permute.xlu0 %373  ;;  %758 = vmatprep.subr.bf16.mxu0 %v845_v30  ;;  %v447_v49 = vld [vmem:[#allocation2 + $0x10] sm:$0xff] }
 0x11e   : > { %378 = vst [vmem:[#allocation2 + $0x28] sm:$0xf] %v377_v45  ;;  %375 = vst [vmem:[#allocation2 + $0x24] sm:$0xf] %v374_v46 }
 0x121   : > { %v383_v47 = vpop.permute.xlu1 %382  ;;  %v380_v48 = vpop.permute.xlu0 %379  ;;  %v448_v50 = vld [vmem:[#allocation2 + $0x18] sm:$0xff] }
 0x122   : > { %384 = vst [vmem:[#allocation2 + $0x30] sm:$0xf] %v383_v47  ;;  %381 = vst [vmem:[#allocation2 + $0x2c] sm:$0xf] %v380_v48  ;;  %v759_v51 = vpack.c.bf16 %v448_v50, %v447_v49 }
 0x124   : > { %760 = vmatpush3.bf16.msra.mxu0 %v759_v51 }
 0x125   : > { %v390_v52 = vpop.permute.xlu1 %389  ;;  %v387_v53 = vpop.permute.xlu0 %386  ;;  %761 = vmatprep.subr.bf16.mxu0 %v845_v30  ;;  %v449_v56 = vld [vmem:[#allocation2 + $0x20] sm:$0xff] }
 0x126   : > { %391 = vst [vmem:[#allocation2 + $0x3c] sm:$0xf] %v390_v52  ;;  %388 = vst [vmem:[#allocation2 + $0x38] sm:$0xf] %v387_v53 }
 0x129   : > { %v396_v54 = vpop.permute.xlu1 %395  ;;  %v393_v55 = vpop.permute.xlu0 %392  ;;  %v450_v57 = vld [vmem:[#allocation2 + $0x28] sm:$0xff]  ;;  %v451_v61 = vld [vmem:[#allocation2 + $0x30] sm:$0xff] }
 0x12a   : > { %397 = vst [vmem:[#allocation2 + $0x44] sm:$0xf] %v396_v54  ;;  %394 = vst [vmem:[#allocation2 + $0x40] sm:$0xf] %v393_v55  ;;  %v762_v58 = vpack.c.bf16 %v450_v57, %v449_v56 }
 0x12c   : > { %763 = vmatpush3.bf16.msra.mxu0 %v762_v58 }
 0x12d   : > { %v423_v59 = vpop.permute.xlu1 %422  ;;  %v420_v60 = vpop.permute.xlu0 %419  ;;  %764 = vmatprep.subr.bf16.mxu0 %v845_v30  ;;  %v452_v62 = vld [vmem:[#allocation2 + $0x38] sm:$0xff] }
 0x12e   : > { %424 = vst [vmem:[#allocation2 + $0x4c] sm:$0xf] %v423_v59  ;;  %421 = vst [vmem:[#allocation2 + $0x48] sm:$0xf] %v420_v60  ;;  %v765_v63 = vpack.c.bf16 %v452_v62, %v451_v61 }
 0x130   : > { %766 = vmatpush3.bf16.msra.mxu0 %v765_v63 }
 0x131   : > { %v429_v0 = vpop.permute.xlu1 %428  ;;  %v426_v1 = vpop.permute.xlu0 %425  ;;  %767 = vmatprep.subr.bf16.mxu0 %v845_v30  ;;  %v453_v4 = vld [vmem:[#allocation2 + $0x40] sm:$0xff] }
 0x132   : > { %430 = vst [vmem:[#allocation2 + $0x54] sm:$0xf] %v429_v0  ;;  %427 = vst [vmem:[#allocation2 + $0x50] sm:$0xf] %v426_v1 }
 0x135   : > { %v436_v2 = vpop.permute.xlu1 %435  ;;  %v433_v3 = vpop.permute.xlu0 %432  ;;  %v454_v5 = vld [vmem:[#allocation2 + $0x48] sm:$0xff] }
 0x136   : > { %437 = vst [vmem:[#allocation2 + $0x60] sm:$0xf] %v436_v2  ;;  %434 = vst [vmem:[#allocation2 + $0x5c] sm:$0xf] %v433_v3  ;;  %v768_v6 = vpack.c.bf16 %v454_v5, %v453_v4 }
 0x138   : > { %769 = vmatpush3.bf16.msra.mxu0 %v768_v6 }
 0x139   : > { %v442_v7 = vpop.permute.xlu1 %441  ;;  %v439_v8 = vpop.permute.xlu0 %438  ;;  %770 = vmatprep.subr.bf16.mxu0 %v845_v30  ;;  %v455_v9 = vld [vmem:[#allocation2 + $0x50] sm:$0xff] }
 0x13a   : > { %443 = vst [vmem:[#allocation2 + $0x68] sm:$0xf] %v442_v7  ;;  %440 = vst [vmem:[#allocation2 + $0x64] sm:$0xf] %v439_v8 }
 0x13d   : > { %v456_v10 = vld [vmem:[#allocation2 + $0x58] sm:$0xff] }
 0x13e   : > { %v771_v11 = vpack.c.bf16 %v456_v10, %v455_v9 }
 0x140   : > { %772 = vmatpush3.bf16.msra.mxu0 %v771_v11 }
 0x141   : > { %773 = vmatprep.subr.bf16.mxu0 %v845_v30  ;;  %v457_v12 = vld [vmem:[#allocation2 + $0x60] sm:$0xff]  ;;  %v458_v13 = vld [vmem:[#allocation2 + $0x68] sm:$0xf] }
 0x142   : > { %v774_v14 = vpack.c.bf16 %v458_v13, %v457_v12 }
 0x144   : > { %776 = vmatpush3.bf16.msk.msra.mxu0 %vm775_vm3, %v774_v14 }
 0x147   : > { %753 = vmatmul.mubr.msk.f32.vlgmr.msra.gmra.mrb[0].mxu0 %vm459_vm4, %v444_v15 }
 0x21a   : > { %v533_v16 = vpop.f32.mrb[0].mxu0 }
 0x21b   : > { %v537_v17 = vmul.f32 %v961_v21, %v533_v16  ;;  %v754_v18 = vpop.f32.mrb[1].mxu0 }
 0x21d   : > { %v538_v19 = vpack.c.bf16 %v537_v17, %v537_v17  ;;  %v540_v20 = vsel %vm463_vm1, %v537_v17, 0.0  ;;  %v545_v22 = vmul.f32 %v537_v17, %v537_v17 }
 0x21e   : > { %541 = vadd.xlane.f32.xlu0 %v540_v20 }
 0x21f   : > { %539 = vst [vmem:[%s923_s7] sm:$0x3] %v538_v19  ;;  %v546_v23 = vsel %vm463_vm1, %v545_v22, 0.0 }
 0x220   : > { %547 = vadd.xlane.f32.xlu1 %v546_v23 }
 0x2ab   : > { %v542_v24 = vpop.xlane.xlu0 %541 }
 0x2ac   : > { %544 = vst.msk [vmem:[%s928_s10] sm:$0xf] %vm543_vm5, %v542_v24 }
 0x2ad   : > { %v548_v25 = vpop.xlane.xlu1 %547 }
 0x2ae   : > { %550 = vst.msk [vmem:[%s928_s10] sm:$0xf] %vm549_vm6, %v548_v25 }
 0x2af PF: > { %553 = sbr.rel (!%p916_p7) target bundleno = 694 (0x2b6), region = 48  ;;  %vm555_vm7 = vcmask (%p916_p7), 11264   ;;  %v855_v21 = vmov (%p916_p7), 0   ;;  %v856_v26 = vmov (%p916_p7), 0.0  }
 0x2b0   : > { %554 = vst [vmem:[%s923_s7] sm:$0x3] (%p916_p7), %v855_v21  ;;  %556 = vst.msk [vmem:[%s928_s10] sm:$0xf] (%p916_p7), %vm555_vm7, %v856_v26 }
 0x2b6 PF: > { %s17_s23 = sadd.s32 1, %s840_s23   ;;  %s1004_s21 = smov %s836_s22 }
 0x2b7   : > { %p14_p8 = scmp.ge.s32.totalorder %s17_s23, 12   ;;  %s1005_s22 = smov %s1007_s24 }
 0x2b9   :  { %16 = sbr.rel (!%p14_p8) target bundleno = 2 (0x2), region = 93 }

</bundles_post_ra>
